<compile_context>
chip_gen: v7x
topology: tpu7x:2x2x1
jax: 0.10.0
libtpu: 0.0.40
codegen_flags: <defaults>
</compile_context>

<pallas_src>
import functools
import math

import jax
import jax.numpy as jnp
from jax import lax
from jax.experimental import pallas as pl
from jax.experimental.pallas import tpu as pltpu


# ---------------------------------------------------------------------------
# Generation-aware tiling / VMEM budget.
# ---------------------------------------------------------------------------
def _tpu_budget():
    """Returns (kernel1_seq_tile, kernel2_q_tile, vmem_limit_bytes)."""
    try:
        vmem = int(pltpu.get_tpu_info().vmem_capacity_bytes)
    except Exception:
        vmem = 64 * 1024 * 1024                      # conservative fallback
    if vmem >= 100 * 1024 * 1024:                    # v5e / v6e: 128 MiB VMEM
        return 512, 256, 96 * 1024 * 1024
    # v7x: 64 MiB physical per TensorCore -> smaller tiles, leave headroom
    # for Mosaic internal scratch and double buffers.
    return 128, 128, 48 * 1024 * 1024


def _pick_block(size, target):
    """`target` if it cleanly tiles `size`, else the full extent."""
    return target if (size >= target and size % target == 0) else size


def _const_spec(shape, index_map, single_buffer):
    """BlockSpec for an operand whose block index is constant (or changes only
    with the batch axis). single_buffer=True avoids wasting a second VMEM
    buffer on a block that is fetched once (pl.Buffered(1))."""
    if single_buffer:
        try:
            return pl.BlockSpec(shape, index_map, pipeline_mode=pl.Buffered(1))
        except Exception:           # older BlockSpec without pipeline_mode
            pass
    return pl.BlockSpec(shape, index_map)


# ---------------------------------------------------------------------------
# Kernel 1: fused Q/K/V projections (one grid step = one (batch, seq-block)).
# ---------------------------------------------------------------------------
def _qkv_proj_kernel(xq_ref, xk_ref, xv_ref, w_ref, b_ref,
                     q_ref, k_ref, v_ref, *, scale, compute_dtype):
    cd = compute_dtype
    xq = xq_ref[0].astype(cd)            # (ts, D)
    xk = xk_ref[0].astype(cd)
    xv = xv_ref[0].astype(cd)

    q = jnp.dot(xq, w_ref[0], preferred_element_type=jnp.float32) + b_ref[0]
    k = jnp.dot(xk, w_ref[1], preferred_element_type=jnp.float32) + b_ref[1]
    v = jnp.dot(xv, w_ref[2], preferred_element_type=jnp.float32) + b_ref[2]

    # Fold the softmax scale into q.
    q_ref[0] = (q * scale).astype(q_ref.dtype)
    k_ref[0] = k.astype(k_ref.dtype)
    v_ref[0] = v.astype(v_ref.dtype)


# ---------------------------------------------------------------------------
# Kernel 2: scaled-dot-product attention (query-block tiled) + W_o projection.
# ---------------------------------------------------------------------------
def _attn_kernel(*refs, num_heads, d_k, has_mask, return_attn, compute_dtype):
    q_ref, k_ref, v_ref, wo_ref, bo_ref = refs[:5]
    idx = 5
    mask_ref = None
    if has_mask:
        mask_ref = refs[idx]
        idx += 1
    out_ref = refs[idx]
    attn_ref = refs[idx + 1] if return_attn else None
    ctx_ref = refs[-1]                   # VMEM scratch (tq, D) compute_dtype

    cd = compute_dtype

    # Mask loaded once per grid step; int8 -> f32 upcast then compare (cheap
    # VPU work, hidden under MXU), bool re-used across heads.
    is_masked = None
    if has_mask:
        is_masked = mask_ref[0, 0].astype(jnp.float32) == 0.0      # (tq, S)

    for h in range(num_heads):
        lo = h * d_k
        hi = lo + d_k
        qh = q_ref[0, :, lo:hi]          # (tq, d_k)  static lane-sliced ref load
        kh = k_ref[0, :, lo:hi]          # (S,  d_k)
        vh = v_ref[0, :, lo:hi]          # (S,  d_k)

        # q @ k^T as a transposed-RHS MXU matmul (no explicit XLU transpose).
        s = lax.dot_general(qh, kh, (((1,), (1,)), ((), ())),
                            preferred_element_type=jnp.float32)     # (tq, S)
        if has_mask:
            s = jnp.where(is_masked, -1e9, s)                       # torch masked_fill

        # Numerically-stable softmax. Exact reciprocal when the probs are
        # returned (PyTorch parity); approx EUP reciprocal otherwise.
        m = jnp.max(s, axis=-1, keepdims=True)
        e = jnp.exp(s - m)
        denom = jnp.sum(e, axis=-1, keepdims=True)
        p = e * pl.reciprocal(denom, approx=not return_attn)

        if return_attn:
            attn_ref[0, h] = p.astype(attn_ref.dtype)

        ctx_h = jnp.dot(p.astype(cd), vh, preferred_element_type=jnp.float32)
        # Stage the per-head context into its lane slice of the (tq, D)
        # scratch; the W_o projection is done once after the loop.
        ctx_ref[:, lo:hi] = ctx_h.astype(cd)

    # Single D-contraction epilogue matmul: full MXU contraction width, no
    # serial per-head accumulation chain.
    out = jnp.dot(ctx_ref[...], wo_ref[...], preferred_element_type=jnp.float32)
    out_ref[0] = (out + bo_ref[...]).astype(out_ref.dtype)


# ---------------------------------------------------------------------------
# Wrapper.
# ---------------------------------------------------------------------------
def multi_head_attention(xq, xk, xv, params, *, num_heads,
                         mask=None, return_attn=True,
                         compute_dtype=jnp.bfloat16,
                         attn_dtype=jnp.float32,
                         q_block=None, s_block=None,
                         single_buffer_constants=True):
    """Pallas MHA forward matching the PyTorch module (eval mode).

    Returns (output, attn_probs); attn_probs is None when return_attn=False.
    `mask` must broadcast to (B, 1, S, S); entries == 0 are filled with -1e9
    before the softmax, exactly like torch's masked_fill.
    On v7x with very large S*H, pass attn_dtype=jnp.bfloat16 (or
    return_attn=False) to shrink the probs block / writeback.
    """
    B, S, D = xq.shape
    assert D % num_heads == 0, 'd_model must be divisible by num_heads'
    d_k = D // num_heads
    cd = compute_dtype
    cd_size = jnp.dtype(cd).itemsize
    x_size = jnp.dtype(xq.dtype).itemsize

    # nn.Linear stores W as (out, in); kernels compute x @ W.T + b.
    w_qkv = jnp.stack([params['w_q']['w'].T,
                       params['w_k']['w'].T,
                       params['w_v']['w'].T]).astype(cd)               # (3, D, D)
    b_qkv = jnp.stack([params['w_q']['b'],
                       params['w_k']['b'],
                       params['w_v']['b']]).reshape(3, 1, D).astype(jnp.float32)
    wo_t = params['w_o']['w'].T.astype(cd)                             # (D, D)
    bo = params['w_o']['b'].reshape(1, D).astype(jnp.float32)          # (1, D)

    ts_tgt, tq_tgt, vmem_limit = _tpu_budget()
    ts = s_block if s_block is not None else _pick_block(S, ts_tgt)
    tq = q_block if q_block is not None else _pick_block(S, tq_tgt)
    assert S % ts == 0 and S % tq == 0

    cparams = pltpu.CompilerParams(
        dimension_semantics=("parallel", "parallel"),   # batch first -> v7x TCs split on B
        vmem_limit_bytes=vmem_limit)

    # ----- kernel 1: fused QKV projection -----------------------------------
    cost1 = pl.CostEstimate(
        flops=6 * B * S * D * D,
        transcendentals=0,
        bytes_accessed=3 * B * S * D * (x_size + cd_size)
        + 3 * D * D * cd_size + 3 * D * 4)

    def run_qkv(sb):
        return pl.pallas_call(
            functools.partial(_qkv_proj_kernel, scale=1.0 / math.sqrt(d_k),
                              compute_dtype=cd),
            out_shape=tuple(jax.ShapeDtypeStruct((B, S, D), cd) for _ in range(3)),
            grid_spec=pltpu.PrefetchScalarGridSpec(
                num_scalar_prefetch=0,
                grid=(B, S // ts),
                in_specs=[
                    pl.BlockSpec((1, ts, D), lambda b, s: (b, s, 0)),       # xq
                    pl.BlockSpec((1, ts, D), lambda b, s: (b, s, 0)),       # xk
                    pl.BlockSpec((1, ts, D), lambda b, s: (b, s, 0)),       # xv
                    _const_spec((3, D, D), lambda b, s: (0, 0, 0), sb),     # W^T
                    _const_spec((3, 1, D), lambda b, s: (0, 0, 0), sb),     # b
                ],
                out_specs=[
                    pl.BlockSpec((1, ts, D), lambda b, s: (b, s, 0)),
                    pl.BlockSpec((1, ts, D), lambda b, s: (b, s, 0)),
                    pl.BlockSpec((1, ts, D), lambda b, s: (b, s, 0)),
                ],
            ),
            compiler_params=cparams,
            cost_estimate=cost1,
        )(xq, xk, xv, w_qkv, b_qkv)

    try:
        q, k, v = run_qkv(single_buffer_constants)
    except Exception:
        if not single_buffer_constants:
            raise
        q, k, v = run_qkv(False)

    # ----- kernel 2: attention + output projection, tiled over query blocks --
    has_mask = mask is not None
    mask_b = None
    if has_mask:
        # int8 mask: 4x less HBM traffic than int32.
        # TODO(synk): a purely causal mask could be generated in-kernel with
        #             broadcasted_iota (no mask DMA at all).
        mask_b = (jnp.broadcast_to(mask, (B, 1, S, S)) != 0).astype(jnp.int8)

    bytes2 = (3 * B * S * D * cd_size + B * S * D * x_size
              + D * D * cd_size + D * 4)
    if has_mask:
        bytes2 += B * S * S                               # int8 mask
    if return_attn:
        bytes2 += B * num_heads * S * S * jnp.dtype(attn_dtype).itemsize
    cost2 = pl.CostEstimate(
        flops=4 * B * S * S * D + 2 * B * S * D * D,
        transcendentals=B * num_heads * S * S,
        bytes_accessed=bytes2)

    def run_attn(sb):
        in_specs = [
            pl.BlockSpec((1, tq, D), lambda b, i: (b, i, 0)),          # q block
            _const_spec((1, S, D), lambda b, i: (b, 0, 0), sb),        # K (per-batch)
            _const_spec((1, S, D), lambda b, i: (b, 0, 0), sb),        # V (per-batch)
            _const_spec((D, D), lambda b, i: (0, 0), sb),              # W_o^T
            _const_spec((1, D), lambda b, i: (0, 0), sb),              # b_o
        ]
        args = [q, k, v, wo_t, bo]
        if has_mask:
            in_specs.append(pl.BlockSpec((1, 1, tq, S), lambda b, i: (b, 0, i, 0)))
            args.append(mask_b)

        out_shapes = [jax.ShapeDtypeStruct((B, S, D), xq.dtype)]
        out_specs = [pl.BlockSpec((1, tq, D), lambda b, i: (b, i, 0))]
        if return_attn:
            # TODO(synk): for very large H*tq*S on v7x, split the probs output
            #             per head (grid (B, H, S//tq)) instead of one block.
            out_shapes.append(
                jax.ShapeDtypeStruct((B, num_heads, S, S), attn_dtype))
            out_specs.append(
                pl.BlockSpec((1, num_heads, tq, S), lambda b, i: (b, 0, i, 0)))

        return pl.pallas_call(
            functools.partial(_attn_kernel, num_heads=num_heads, d_k=d_k,
                              has_mask=has_mask, return_attn=return_attn,
                              compute_dtype=cd),
            out_shape=tuple(out_shapes),
            grid_spec=pltpu.PrefetchScalarGridSpec(
                num_scalar_prefetch=0,
                grid=(B, S // tq),
                in_specs=in_specs,
                out_specs=out_specs,
                scratch_shapes=[pltpu.VMEM((tq, D), cd)],   # staged context
            ),
            compiler_params=cparams,
            cost_estimate=cost2,
        )(*args)

    try:
        res = run_attn(single_buffer_constants)
    except Exception:
        if not single_buffer_constants:
            raise
        res = run_attn(False)

    if return_attn:
        return res[0], res[1]
    return res[0], None


# ---------------------------------------------------------------------------
# Pure-JAX fp32 reference (mirrors the PyTorch forward, eval mode).
# ---------------------------------------------------------------------------
def _reference_mha(xq, xk, xv, params, num_heads, mask=None):
    B, S, D = xq.shape
    d_k = D // num_heads

    def lin(x, p):
        return x @ p['w'].T + p['b']

    q = lin(xq, params['w_q']).reshape(B, S, num_heads, d_k).transpose(0, 2, 1, 3)
    k = lin(xk, params['w_k']).reshape(B, S, num_heads, d_k).transpose(0, 2, 1, 3)
    v = lin(xv, params['w_v']).reshape(B, S, num_heads, d_k).transpose(0, 2, 1, 3)
    scores = jnp.einsum('bhqd,bhkd->bhqk', q, k) / math.sqrt(d_k)
    if mask is not None:
        scores = jnp.where(mask == 0, -1e9, scores)
    probs = jax.nn.softmax(scores, axis=-1)
    ctx = jnp.einsum('bhqk,bhkd->bhqd', probs, v)
    ctx = ctx.transpose(0, 2, 1, 3).reshape(B, S, D)
    out = lin(ctx, params['w_o'])
    return out, probs


if __name__ == "__main__":
    B, S, D, H = 2, 8, 32, 4   # batch, seq, d_model, num_heads  (d_k = 8)

    key = jax.random.PRNGKey(0)
    keys = jax.random.split(key, 12)

    def make_linear(kw, kb, fan_in):
        bound = 1.0 / math.sqrt(fan_in)
        return {
            'w': jax.random.uniform(kw, (D, D), jnp.float32, -bound, bound),
            'b': jax.random.uniform(kb, (D,), jnp.float32, -bound, bound),
        }

    params = {
        'w_q': make_linear(keys[0], keys[1], D),
        'w_k': make_linear(keys[2], keys[3], D),
        'w_v': make_linear(keys[4], keys[5], D),
        'w_o': make_linear(keys[6], keys[7], D),
    }

    xq = jax.random.normal(keys[8], (B, S, D), jnp.float32)
    xk = jax.random.normal(keys[9], (B, S, D), jnp.float32)
    xv = jax.random.normal(keys[10], (B, S, D), jnp.float32)
    causal = jnp.broadcast_to(
        jnp.tril(jnp.ones((S, S), jnp.int32))[None, None], (B, 1, S, S))

    # 1) fp32 compute path (tight numerics check vs the torch-equivalent ref).
    out, attn = multi_head_attention(xq, xk, xv, params, num_heads=H,
                                     compute_dtype=jnp.float32)
    out = jax.block_until_ready(out)
    attn = jax.block_until_ready(attn)
    ref_out, ref_attn = _reference_mha(xq, xk, xv, params, H)
    assert out.shape == (B, S, D) and attn.shape == (B, H, S, S)
    assert jnp.allclose(out, ref_out, atol=1e-2, rtol=1e-2)
    assert jnp.allclose(attn, ref_attn, atol=3e-3, rtol=1e-2)

    # 2) bf16 MXU path (the performance configuration) with a causal mask.
    out_bf, attn_bf = multi_head_attention(xq, xk, xv, params, num_heads=H,
                                           mask=causal,
                                           compute_dtype=jnp.bfloat16)
    out_bf = jax.block_until_ready(out_bf)
    ref_out_m, ref_attn_m = _reference_mha(xq, xk, xv, params, H, mask=causal)
    assert jnp.allclose(out_bf, ref_out_m, atol=5e-2, rtol=5e-2)
    assert jnp.allclose(attn_bf, ref_attn_m, atol=3e-2, rtol=3e-2)

    # 3) fast path that skips the (B, H, S, S) attn-probs HBM writeback.
    out_fast, attn_none = multi_head_attention(xq, xk, xv, params, num_heads=H,
                                               return_attn=False,
                                               compute_dtype=jnp.bfloat16)
    out_fast = jax.block_until_ready(out_fast)
    assert attn_none is None
    assert jnp.allclose(out_fast, ref_out, atol=5e-2, rtol=5e-2)

    print("KERNEL_OK")
</pallas_src>

<mosaic_0001>
module attributes {stable_mosaic.version = 11 : i64} {
  func.func @_qkv_proj_kernel(%arg0: i32, %arg1: i32, %arg2: memref<1x8x32xf32, #tpu.memory_space<vmem>>, %arg3: memref<1x8x32xf32, #tpu.memory_space<vmem>>, %arg4: memref<1x8x32xf32, #tpu.memory_space<vmem>>, %arg5: memref<3x32x32xf32, #tpu.memory_space<vmem>>, %arg6: memref<3x1x32xf32, #tpu.memory_space<vmem>>, %arg7: memref<1x8x32xf32, #tpu.memory_space<vmem>>, %arg8: memref<1x8x32xf32, #tpu.memory_space<vmem>>, %arg9: memref<1x8x32xf32, #tpu.memory_space<vmem>>) attributes {dimension_semantics = [#tpu.dimension_semantics<parallel>, #tpu.dimension_semantics<parallel>], iteration_bounds = array<i64: 2, 1>, scalar_prefetch = 0 : i64, scratch_operands = 0 : i64, tpu.core_type = #tpu.core_type<tc>, window_params = [{transform_indices = @transform_0, window_bounds = array<i64: 1, 8, 32>}, {transform_indices = @transform_1, window_bounds = array<i64: 1, 8, 32>}, {transform_indices = @transform_2, window_bounds = array<i64: 1, 8, 32>}, {pipeline_mode = #tpu.pipeline_mode<synchronous>, transform_indices = @transform_3, window_bounds = array<i64: 3, 32, 32>}, {pipeline_mode = #tpu.pipeline_mode<synchronous>, transform_indices = @transform_4, window_bounds = array<i64: 3, 1, 32>}, {transform_indices = @transform_5, window_bounds = array<i64: 1, 8, 32>}, {transform_indices = @transform_6, window_bounds = array<i64: 1, 8, 32>}, {transform_indices = @transform_7, window_bounds = array<i64: 1, 8, 32>}]} {
    %c0 = arith.constant 0 : index
    %c0_0 = arith.constant 0 : index
    %c0_1 = arith.constant 0 : index
    %0 = vector.load %arg2[%c0, %c0_0, %c0_1] : memref<1x8x32xf32, #tpu.memory_space<vmem>>, vector<1x8x32xf32>
    %1 = vector.shape_cast %0 : vector<1x8x32xf32> to vector<8x32xf32>
    %c0_2 = arith.constant 0 : index
    %c0_3 = arith.constant 0 : index
    %c0_4 = arith.constant 0 : index
    %2 = vector.load %arg3[%c0_2, %c0_3, %c0_4] : memref<1x8x32xf32, #tpu.memory_space<vmem>>, vector<1x8x32xf32>
    %3 = vector.shape_cast %2 : vector<1x8x32xf32> to vector<8x32xf32>
    %c0_5 = arith.constant 0 : index
    %c0_6 = arith.constant 0 : index
    %c0_7 = arith.constant 0 : index
    %4 = vector.load %arg4[%c0_5, %c0_6, %c0_7] : memref<1x8x32xf32, #tpu.memory_space<vmem>>, vector<1x8x32xf32>
    %5 = vector.shape_cast %4 : vector<1x8x32xf32> to vector<8x32xf32>
    %c0_8 = arith.constant 0 : index
    %c0_9 = arith.constant 0 : index
    %c0_10 = arith.constant 0 : index
    %6 = vector.load %arg5[%c0_8, %c0_9, %c0_10] : memref<3x32x32xf32, #tpu.memory_space<vmem>>, vector<1x32x32xf32>
    %7 = vector.shape_cast %6 : vector<1x32x32xf32> to vector<32x32xf32>
    %cst = arith.constant dense<0.000000e+00> : vector<8x32xf32>
    %8 = tpu.matmul %1, %7, %cst {dimension_numbers = #tpu.dot_dimension_numbers<[1], [0], [0], [1], [0, 0, 1, 1], [], []>} : vector<8x32xf32>, vector<32x32xf32>, vector<8x32xf32> -> vector<8x32xf32>
    %c0_11 = arith.constant 0 : index
    %c0_12 = arith.constant 0 : index
    %c0_13 = arith.constant 0 : index
    %9 = vector.load %arg6[%c0_11, %c0_12, %c0_13] : memref<3x1x32xf32, #tpu.memory_space<vmem>>, vector<1x1x32xf32>
    %10 = vector.shape_cast %9 : vector<1x1x32xf32> to vector<1x32xf32>
    %11 = vector.broadcast %10 : vector<1x32xf32> to vector<8x32xf32>
    %12 = arith.addf %8, %11 : vector<8x32xf32>
    %c1 = arith.constant 1 : index
    %c0_14 = arith.constant 0 : index
    %c0_15 = arith.constant 0 : index
    %13 = vector.load %arg5[%c1, %c0_14, %c0_15] : memref<3x32x32xf32, #tpu.memory_space<vmem>>, vector<1x32x32xf32>
    %14 = vector.shape_cast %13 : vector<1x32x32xf32> to vector<32x32xf32>
    %cst_16 = arith.constant dense<0.000000e+00> : vector<8x32xf32>
    %15 = tpu.matmul %3, %14, %cst_16 {dimension_numbers = #tpu.dot_dimension_numbers<[1], [0], [0], [1], [0, 0, 1, 1], [], []>} : vector<8x32xf32>, vector<32x32xf32>, vector<8x32xf32> -> vector<8x32xf32>
    %c1_17 = arith.constant 1 : index
    %c0_18 = arith.constant 0 : index
    %c0_19 = arith.constant 0 : index
    %16 = vector.load %arg6[%c1_17, %c0_18, %c0_19] : memref<3x1x32xf32, #tpu.memory_space<vmem>>, vector<1x1x32xf32>
    %17 = vector.shape_cast %16 : vector<1x1x32xf32> to vector<1x32xf32>
    %18 = vector.broadcast %17 : vector<1x32xf32> to vector<8x32xf32>
    %19 = arith.addf %15, %18 : vector<8x32xf32>
    %c2 = arith.constant 2 : index
    %c0_20 = arith.constant 0 : index
    %c0_21 = arith.constant 0 : index
    %20 = vector.load %arg5[%c2, %c0_20, %c0_21] : memref<3x32x32xf32, #tpu.memory_space<vmem>>, vector<1x32x32xf32>
    %21 = vector.shape_cast %20 : vector<1x32x32xf32> to vector<32x32xf32>
    %cst_22 = arith.constant dense<0.000000e+00> : vector<8x32xf32>
    %22 = tpu.matmul %5, %21, %cst_22 {dimension_numbers = #tpu.dot_dimension_numbers<[1], [0], [0], [1], [0, 0, 1, 1], [], []>} : vector<8x32xf32>, vector<32x32xf32>, vector<8x32xf32> -> vector<8x32xf32>
    %c2_23 = arith.constant 2 : index
    %c0_24 = arith.constant 0 : index
    %c0_25 = arith.constant 0 : index
    %23 = vector.load %arg6[%c2_23, %c0_24, %c0_25] : memref<3x1x32xf32, #tpu.memory_space<vmem>>, vector<1x1x32xf32>
    %24 = vector.shape_cast %23 : vector<1x1x32xf32> to vector<1x32xf32>
    %25 = vector.broadcast %24 : vector<1x32xf32> to vector<8x32xf32>
    %26 = arith.addf %22, %25 : vector<8x32xf32>
    %cst_26 = arith.constant 0.353553385 : f32
    %27 = vector.broadcast %cst_26 : f32 to vector<8x32xf32>
    %28 = arith.mulf %12, %27 : vector<8x32xf32>
    %c0_27 = arith.constant 0 : index
    %c0_28 = arith.constant 0 : index
    %c0_29 = arith.constant 0 : index
    %29 = vector.load %arg7[%c0_27, %c0_28, %c0_29] : memref<1x8x32xf32, #tpu.memory_space<vmem>>, vector<1x8x32xf32>
    %30 = vector.shape_cast %29 : vector<1x8x32xf32> to vector<8x32xf32>
    %31 = vector.shape_cast %28 : vector<8x32xf32> to vector<1x8x32xf32>
    tpu.vector_store %arg7[%c0_27, %c0_28, %c0_29], %31 {strides = array<i32>} : memref<1x8x32xf32, #tpu.memory_space<vmem>>, vector<1x8x32xf32>,
    %c0_30 = arith.constant 0 : index
    %c0_31 = arith.constant 0 : index
    %c0_32 = arith.constant 0 : index
    %32 = vector.load %arg8[%c0_30, %c0_31, %c0_32] : memref<1x8x32xf32, #tpu.memory_space<vmem>>, vector<1x8x32xf32>
    %33 = vector.shape_cast %32 : vector<1x8x32xf32> to vector<8x32xf32>
    %34 = vector.shape_cast %19 : vector<8x32xf32> to vector<1x8x32xf32>
    tpu.vector_store %arg8[%c0_30, %c0_31, %c0_32], %34 {strides = array<i32>} : memref<1x8x32xf32, #tpu.memory_space<vmem>>, vector<1x8x32xf32>,
    %c0_33 = arith.constant 0 : index
    %c0_34 = arith.constant 0 : index
    %c0_35 = arith.constant 0 : index
    %35 = vector.load %arg9[%c0_33, %c0_34, %c0_35] : memref<1x8x32xf32, #tpu.memory_space<vmem>>, vector<1x8x32xf32>
    %36 = vector.shape_cast %35 : vector<1x8x32xf32> to vector<8x32xf32>
    %37 = vector.shape_cast %26 : vector<8x32xf32> to vector<1x8x32xf32>
    tpu.vector_store %arg9[%c0_33, %c0_34, %c0_35], %37 {strides = array<i32>} : memref<1x8x32xf32, #tpu.memory_space<vmem>>, vector<1x8x32xf32>,
    return
  }
  func.func @transform_0(%arg0: i32, %arg1: i32) -> (i32, i32, i32) {
    %c0_i32 = arith.constant 0 : i32
    %c0_i32_0 = arith.constant 0 : i32
    return %arg0, %arg1, %c0_i32 : i32, i32, i32
  }
  func.func @transform_1(%arg0: i32, %arg1: i32) -> (i32, i32, i32) {
    %c0_i32 = arith.constant 0 : i32
    %c0_i32_0 = arith.constant 0 : i32
    return %arg0, %arg1, %c0_i32 : i32, i32, i32
  }
  func.func @transform_2(%arg0: i32, %arg1: i32) -> (i32, i32, i32) {
    %c0_i32 = arith.constant 0 : i32
    %c0_i32_0 = arith.constant 0 : i32
    return %arg0, %arg1, %c0_i32 : i32, i32, i32
  }
  func.func @transform_3(%arg0: i32, %arg1: i32) -> (i32, i32, i32) {
    %c0_i32 = arith.constant 0 : i32
    %c0_i32_0 = arith.constant 0 : i32
    %c0_i32_1 = arith.constant 0 : i32
    %c0_i32_2 = arith.constant 0 : i32
    return %c0_i32, %c0_i32_0, %c0_i32_1 : i32, i32, i32
  }
  func.func @transform_4(%arg0: i32, %arg1: i32) -> (i32, i32, i32) {
    %c0_i32 = arith.constant 0 : i32
    %c0_i32_0 = arith.constant 0 : i32
    %c0_i32_1 = arith.constant 0 : i32
    %c0_i32_2 = arith.constant 0 : i32
    return %c0_i32, %c0_i32_0, %c0_i32_1 : i32, i32, i32
  }
  func.func @transform_5(%arg0: i32, %arg1: i32) -> (i32, i32, i32) {
    %c0_i32 = arith.constant 0 : i32
    %c0_i32_0 = arith.constant 0 : i32
    return %arg0, %arg1, %c0_i32 : i32, i32, i32
  }
  func.func @transform_6(%arg0: i32, %arg1: i32) -> (i32, i32, i32) {
    %c0_i32 = arith.constant 0 : i32
    %c0_i32_0 = arith.constant 0 : i32
    return %arg0, %arg1, %c0_i32 : i32, i32, i32
  }
  func.func @transform_7(%arg0: i32, %arg1: i32) -> (i32, i32, i32) {
    %c0_i32 = arith.constant 0 : i32
    %c0_i32_0 = arith.constant 0 : i32
    return %arg0, %arg1, %c0_i32 : i32, i32, i32
  }
}

module attributes {stable_mosaic.version = 11 : i64} {
  func.func @_qkv_proj_kernel(%arg0: i32, %arg1: i32, %arg2: memref<1x8x32xf32, #tpu.memory_space<vmem>>, %arg3: memref<1x8x32xf32, #tpu.memory_space<vmem>>, %arg4: memref<1x8x32xf32, #tpu.memory_space<vmem>>, %arg5: memref<3x32x32xf32, #tpu.memory_space<vmem>>, %arg6: memref<3x1x32xf32, #tpu.memory_space<vmem>>, %arg7: memref<1x8x32xf32, #tpu.memory_space<vmem>>, %arg8: memref<1x8x32xf32, #tpu.memory_space<vmem>>, %arg9: memref<1x8x32xf32, #tpu.memory_space<vmem>>) attributes {dimension_semantics = [#tpu.dimension_semantics<parallel>, #tpu.dimension_semantics<parallel>], iteration_bounds = array<i64: 2, 1>, scalar_prefetch = 0 : i64, scratch_operands = 0 : i64, tpu.core_type = #tpu.core_type<tc>, window_params = [{transform_indices = @transform_0, window_bounds = array<i64: 1, 8, 32>}, {transform_indices = @transform_1, window_bounds = array<i64: 1, 8, 32>}, {transform_indices = @transform_2, window_bounds = array<i64: 1, 8, 32>}, {pipeline_mode = #tpu.pipeline_mode<synchronous>, transform_indices = @transform_3, window_bounds = array<i64: 3, 32, 32>}, {pipeline_mode = #tpu.pipeline_mode<synchronous>, transform_indices = @transform_4, window_bounds = array<i64: 3, 1, 32>}, {transform_indices = @transform_5, window_bounds = array<i64: 1, 8, 32>}, {transform_indices = @transform_6, window_bounds = array<i64: 1, 8, 32>}, {transform_indices = @transform_7, window_bounds = array<i64: 1, 8, 32>}]} {
    %c0 = arith.constant 0 : index
    %c0_0 = arith.constant 0 : index
    %c0_1 = arith.constant 0 : index
    %0 = vector.load %arg2[%c0, %c0_0, %c0_1] : memref<1x8x32xf32, #tpu.memory_space<vmem>>, vector<1x8x32xf32>
    %1 = vector.shape_cast %0 : vector<1x8x32xf32> to vector<8x32xf32>
    %c0_2 = arith.constant 0 : index
    %c0_3 = arith.constant 0 : index
    %c0_4 = arith.constant 0 : index
    %2 = vector.load %arg3[%c0_2, %c0_3, %c0_4] : memref<1x8x32xf32, #tpu.memory_space<vmem>>, vector<1x8x32xf32>
    %3 = vector.shape_cast %2 : vector<1x8x32xf32> to vector<8x32xf32>
    %c0_5 = arith.constant 0 : index
    %c0_6 = arith.constant 0 : index
    %c0_7 = arith.constant 0 : index
    %4 = vector.load %arg4[%c0_5, %c0_6, %c0_7] : memref<1x8x32xf32, #tpu.memory_space<vmem>>, vector<1x8x32xf32>
    %5 = vector.shape_cast %4 : vector<1x8x32xf32> to vector<8x32xf32>
    %c0_8 = arith.constant 0 : index
    %c0_9 = arith.constant 0 : index
    %c0_10 = arith.constant 0 : index
    %6 = vector.load %arg5[%c0_8, %c0_9, %c0_10] : memref<3x32x32xf32, #tpu.memory_space<vmem>>, vector<1x32x32xf32>
    %7 = vector.shape_cast %6 : vector<1x32x32xf32> to vector<32x32xf32>
    %cst = arith.constant dense<0.000000e+00> : vector<8x32xf32>
    %8 = tpu.matmul %1, %7, %cst {dimension_numbers = #tpu.dot_dimension_numbers<[1], [0], [0], [1], [0, 0, 1, 1], [], []>} : vector<8x32xf32>, vector<32x32xf32>, vector<8x32xf32> -> vector<8x32xf32>
    %c0_11 = arith.constant 0 : index
    %c0_12 = arith.constant 0 : index
    %c0_13 = arith.constant 0 : index
    %9 = vector.load %arg6[%c0_11, %c0_12, %c0_13] : memref<3x1x32xf32, #tpu.memory_space<vmem>>, vector<1x1x32xf32>
    %10 = vector.shape_cast %9 : vector<1x1x32xf32> to vector<1x32xf32>
    %11 = vector.broadcast %10 : vector<1x32xf32> to vector<8x32xf32>
    %12 = arith.addf %8, %11 : vector<8x32xf32>
    %c1 = arith.constant 1 : index
    %c0_14 = arith.constant 0 : index
    %c0_15 = arith.constant 0 : index
    %13 = vector.load %arg5[%c1, %c0_14, %c0_15] : memref<3x32x32xf32, #tpu.memory_space<vmem>>, vector<1x32x32xf32>
    %14 = vector.shape_cast %13 : vector<1x32x32xf32> to vector<32x32xf32>
    %cst_16 = arith.constant dense<0.000000e+00> : vector<8x32xf32>
    %15 = tpu.matmul %3, %14, %cst_16 {dimension_numbers = #tpu.dot_dimension_numbers<[1], [0], [0], [1], [0, 0, 1, 1], [], []>} : vector<8x32xf32>, vector<32x32xf32>, vector<8x32xf32> -> vector<8x32xf32>
    %c1_17 = arith.constant 1 : index
    %c0_18 = arith.constant 0 : index
    %c0_19 = arith.constant 0 : index
    %16 = vector.load %arg6[%c1_17, %c0_18, %c0_19] : memref<3x1x32xf32, #tpu.memory_space<vmem>>, vector<1x1x32xf32>
    %17 = vector.shape_cast %16 : vector<1x1x32xf32> to vector<1x32xf32>
    %18 = vector.broadcast %17 : vector<1x32xf32> to vector<8x32xf32>
    %19 = arith.addf %15, %18 : vector<8x32xf32>
    %c2 = arith.constant 2 : index
    %c0_20 = arith.constant 0 : index
    %c0_21 = arith.constant 0 : index
    %20 = vector.load %arg5[%c2, %c0_20, %c0_21] : memref<3x32x32xf32, #tpu.memory_space<vmem>>, vector<1x32x32xf32>
    %21 = vector.shape_cast %20 : vector<1x32x32xf32> to vector<32x32xf32>
    %cst_22 = arith.constant dense<0.000000e+00> : vector<8x32xf32>
    %22 = tpu.matmul %5, %21, %cst_22 {dimension_numbers = #tpu.dot_dimension_numbers<[1], [0], [0], [1], [0, 0, 1, 1], [], []>} : vector<8x32xf32>, vector<32x32xf32>, vector<8x32xf32> -> vector<8x32xf32>
    %c2_23 = arith.constant 2 : index
    %c0_24 = arith.constant 0 : index
    %c0_25 = arith.constant 0 : index
    %23 = vector.load %arg6[%c2_23, %c0_24, %c0_25] : memref<3x1x32xf32, #tpu.memory_space<vmem>>, vector<1x1x32xf32>
    %24 = vector.shape_cast %23 : vector<1x1x32xf32> to vector<1x32xf32>
    %25 = vector.broadcast %24 : vector<1x32xf32> to vector<8x32xf32>
    %26 = arith.addf %22, %25 : vector<8x32xf32>
    %cst_26 = arith.constant 0.353553385 : f32
    %27 = vector.broadcast %cst_26 : f32 to vector<8x32xf32>
    %28 = arith.mulf %12, %27 : vector<8x32xf32>
    %c0_27 = arith.constant 0 : index
    %c0_28 = arith.constant 0 : index
    %c0_29 = arith.constant 0 : index
    %29 = vector.load %arg7[%c0_27, %c0_28, %c0_29] : memref<1x8x32xf32, #tpu.memory_space<vmem>>, vector<1x8x32xf32>
    %30 = vector.shape_cast %29 : vector<1x8x32xf32> to vector<8x32xf32>
    %31 = vector.shape_cast %28 : vector<8x32xf32> to vector<1x8x32xf32>
    tpu.vector_store %arg7[%c0_27, %c0_28, %c0_29], %31 {strides = array<i32>} : memref<1x8x32xf32, #tpu.memory_space<vmem>>, vector<1x8x32xf32>,
    %c0_30 = arith.constant 0 : index
    %c0_31 = arith.constant 0 : index
    %c0_32 = arith.constant 0 : index
    %32 = vector.load %arg8[%c0_30, %c0_31, %c0_32] : memref<1x8x32xf32, #tpu.memory_space<vmem>>, vector<1x8x32xf32>
    %33 = vector.shape_cast %32 : vector<1x8x32xf32> to vector<8x32xf32>
    %34 = vector.shape_cast %19 : vector<8x32xf32> to vector<1x8x32xf32>
    tpu.vector_store %arg8[%c0_30, %c0_31, %c0_32], %34 {strides = array<i32>} : memref<1x8x32xf32, #tpu.memory_space<vmem>>, vector<1x8x32xf32>,
    %c0_33 = arith.constant 0 : index
    %c0_34 = arith.constant 0 : index
    %c0_35 = arith.constant 0 : index
    %35 = vector.load %arg9[%c0_33, %c0_34, %c0_35] : memref<1x8x32xf32, #tpu.memory_space<vmem>>, vector<1x8x32xf32>
    %36 = vector.shape_cast %35 : vector<1x8x32xf32> to vector<8x32xf32>
    %37 = vector.shape_cast %26 : vector<8x32xf32> to vector<1x8x32xf32>
    tpu.vector_store %arg9[%c0_33, %c0_34, %c0_35], %37 {strides = array<i32>} : memref<1x8x32xf32, #tpu.memory_space<vmem>>, vector<1x8x32xf32>,
    return
  }
  func.func @transform_0(%arg0: i32, %arg1: i32) -> (i32, i32, i32) {
    %c0_i32 = arith.constant 0 : i32
    %c0_i32_0 = arith.constant 0 : i32
    return %arg0, %arg1, %c0_i32 : i32, i32, i32
  }
  func.func @transform_1(%arg0: i32, %arg1: i32) -> (i32, i32, i32) {
    %c0_i32 = arith.constant 0 : i32
    %c0_i32_0 = arith.constant 0 : i32
    return %arg0, %arg1, %c0_i32 : i32, i32, i32
  }
  func.func @transform_2(%arg0: i32, %arg1: i32) -> (i32, i32, i32) {
    %c0_i32 = arith.constant 0 : i32
    %c0_i32_0 = arith.constant 0 : i32
    return %arg0, %arg1, %c0_i32 : i32, i32, i32
  }
  func.func @transform_3(%arg0: i32, %arg1: i32) -> (i32, i32, i32) {
    %c0_i32 = arith.constant 0 : i32
    %c0_i32_0 = arith.constant 0 : i32
    %c0_i32_1 = arith.constant 0 : i32
    %c0_i32_2 = arith.constant 0 : i32
    return %c0_i32, %c0_i32_0, %c0_i32_1 : i32, i32, i32
  }
  func.func @transform_4(%arg0: i32, %arg1: i32) -> (i32, i32, i32) {
    %c0_i32 = arith.constant 0 : i32
    %c0_i32_0 = arith.constant 0 : i32
    %c0_i32_1 = arith.constant 0 : i32
    %c0_i32_2 = arith.constant 0 : i32
    return %c0_i32, %c0_i32_0, %c0_i32_1 : i32, i32, i32
  }
  func.func @transform_5(%arg0: i32, %arg1: i32) -> (i32, i32, i32) {
    %c0_i32 = arith.constant 0 : i32
    %c0_i32_0 = arith.constant 0 : i32
    return %arg0, %arg1, %c0_i32 : i32, i32, i32
  }
  func.func @transform_6(%arg0: i32, %arg1: i32) -> (i32, i32, i32) {
    %c0_i32 = arith.constant 0 : i32
    %c0_i32_0 = arith.constant 0 : i32
    return %arg0, %arg1, %c0_i32 : i32, i32, i32
  }
  func.func @transform_7(%arg0: i32, %arg1: i32) -> (i32, i32, i32) {
    %c0_i32 = arith.constant 0 : i32
    %c0_i32_0 = arith.constant 0 : i32
    return %arg0, %arg1, %c0_i32 : i32, i32, i32
  }
}

</mosaic_0001>

<bundles_post_ra>
// kernel: tpu_custom_call.1
= control target key start
LH: loop header
LB: loop body
LE: loop exit
PB: predicated region body
PF: predicated region fallthrough
CT: control target
= control target key end

     0   :  { %s1862_s0 = inlined_call_operand.hbm [shape: f32[2,8,32], index: 0, kind: input, shape index: {}]   ;;  %s1863_s1 = inlined_call_operand.hbm [shape: f32[2,8,32], index: 1, kind: input, shape index: {}]   ;;  %s1864_s2 = inlined_call_operand.hbm [shape: f32[2,8,32], index: 2, kind: input, shape index: {}]   ;;  %s1865_s3 = inlined_call_operand.hbm [shape: f32[3,32,32], index: 3, kind: input, shape index: {}]   ;;  %s1866_s4 = inlined_call_operand.vmem [shape: f32[3,1,32], index: 4, kind: input, shape index: {}]   ;;  %s1867_s5 = inlined_call_operand.hbm [shape: f32[2,8,32], index: 5, kind: output, shape index: {0}]   ;;  %s1868_s6 = inlined_call_operand.hbm [shape: f32[2,8,32], index: 6, kind: output, shape index: {1}]   ;;  %s1869_s7 = inlined_call_operand.hbm [shape: f32[2,8,32], index: 7, kind: output, shape index: {2}]  }
   0x1   :  { %1892 = sst [smem:[#allocation26_spill]] %s1863_s1 }
   0x2   :  { %1893 = sst [smem:[#allocation27_spill]] %s1867_s5 }
   0x3   :  { %1894 = sst [smem:[#allocation28_spill]] %s1868_s6 }
   0x4   :  { %1895 = sst [smem:[#allocation29_spill]] %s1869_s7 }
   0x5   :  { %13 = vsyncpa [#allocation3], 0 }
   0x6   :  { %15 = vsyncpa [#allocation3 + $0x1], 0 }
   0x7   :  { %16 = vsyncpa [#allocation6], 0 }
   0x8   :  { %18 = vsyncpa [#allocation6 + $0x1], 0 }
   0x9   :  { %19 = vsyncpa [#allocation9], 0 }
   0xa   :  { %20 = vsyncpa [#allocation4], 0 }
   0xb   :  { %22 = vsyncpa [#allocation4 + $0x1], 0 }
   0xc   :  { %23 = vsyncpa [#allocation12], 0 }
   0xd   :  { %25 = vsyncpa [#allocation12 + $0x1], 0  ;;  %s1461_s24 = smov 0   ;;  %s1463_s25 = smov 0  }
   0xe   :  { %s1465_s26 = smov 0   ;;  %s1467_s27 = smov 0  }
   0xf   :  { %s1469_s28 = smov 0   ;;  %s1471_s29 = smov 0  }
  0x10 LB: > { %1896 = sst [smem:[#allocation19_spill]] %s1387_s24  ;;  %s43_s30 = sadd.s32 1, %s1403_s28  ;;  %s1407_s29 = sphi %s1471_s29, %s31_s29   ;;  %s1403_s28 = sphi %s1469_s28, %s1937_s28   ;;  %s1399_s27 = sphi %s1467_s27, %s1932_s27   ;;  %s1395_s26 = sphi %s1465_s26, %s1936_s26   ;;  %s1391_s25 = sphi %s1463_s25, %s1935_s25   ;;  %s1387_s24 = sphi %s1461_s24, %s1934_s24  }
  0x11   : > { %1897 = sst [smem:[#allocation20_spill]] %s1403_s28  ;;  %s52_s8 = sadd.s32 1, %s1395_s26 }
  0x12   : > { %1898 = sst [smem:[#allocation21_spill]] %s1407_s29  ;;  %p45_p0 = scmp.ge.s32.totalorder %s43_s30, 2 }
  0x13   : > { %p1870_p1 = scmp.ne.s32.totalorder %s1395_s26, %s1391_s25  ;;  %p60_p2 = scmp.eq.s32.totalorder %s1407_s29, 0 }
  0x14   : > { %s1939_s30 = smov (%p45_p0, %s43_s30), 0  ;;  %p1082_p5 = scmp.lt.s32.totalorder %s1407_s29, 2 }
  0x15   : > { %1899 = sst [smem:[#allocation22_spill]] %s1939_s30  ;;  %p61_p4 = por %p60_p2, %p1870_p1 }
  0x16   : > { %s47_s9 = ssub.s32 %s1403_s28, %s1939_s30  ;;  %s1872_s10 = sand.u32 1, %s1395_s26  }
  0x17   : > { %p50_p6 = scmp.eq.s32.totalorder %s47_s9, 0  ;;  %s1508_s11 = sshll.u32 %s1872_s10, 3 }
  0x18   : > { %s1511_s12 = sshll.u32 %s1403_s28, 7  ;;  %p1513_p7 = pnand %p1082_p5, %p61_p4 }
  0x19   : > { %s1518_s14 = scalar_select %p50_p6, %s1395_s26, %s52_s8  }
  0x1a   : > { %s1900_s13 = scalar_select %p1513_p7, 1, 0 }
  0x1b   : > { %1901 = sst [smem:[#allocation23_spill]] %s1518_s14  ;;  %s306_s15 = sand.u32 1, %s1407_s29  }
  0x1c   : > { %s1902_s1 = sld [smem:[#allocation26_spill]]  ;;  %s310_s19 = scalar_lea.vmem [#allocation5], %s1508_s11 }
  0x1d   : > { %s318_s20 = sshll.u32 %s310_s19, 4  ;;  %s1530_s21 = scalar_lea.sflag [#allocation6], %s306_s15  ;;  %s1528_s20 = int_to_ptr.vmem [resolvable:$true] %s318_s20 }
  0x1e   : > { %p1536_p9 = pneg %p1513_p7 }
  0x20   : > { %s1903_s23 = scalar_select %p1536_p9, 1, 0 }
  0x22   : > { %s1525_s18 = scalar_lea.hbm %s1902_s1, %s1511_s12  ;;  %s1144_s16 = scalar_lea.hbm %s1902_s1, 256 }
  0x23   : > { %s1139_s22 = scalar_lea.hbm %s1525_s18, 128  ;;  %p1145_p12 = scmp.lt.u32.totalorder %s1525_s18, %s1902_s1 }
  0x24   : > { %p1140_p8 = scmp.ne.s32.totalorder %s1525_s18, %s1139_s22  ;;  %p1146_p13 = scmp.lt.u32.totalorder %s1144_s16, %s1139_s22 }
  0x25   : > { %p1148_p2 = scmp.lt.u32.totalorder %s1139_s22, %s1525_s18 }
  0x26   : > { %p1142_p10 = pnand %p1536_p9, %p1140_p8  ;;  %p1147_p0 = por %p1146_p13, %p1145_p12 }
  0x28   : > { %p1143_p11 = pneg %p1142_p10  ;;  %p1149_p4 = por %p1148_p2, %p1147_p0 }
  0x2a   : > { %p1150_p5 = pnand %p1149_p4, %p1143_p11 }
  0x2c   : > { %1153 = shalt.err (!%p1150_p5)
}
  0x2d   : > { %s1154_s15 = scalar_lea.vmem %s1528_s20, 128  ;;  %s1409_s8 = smov [#allocation5]  }
  0x2e   : > { %p1155_p6 = scmp.ne.s32.totalorder %s1528_s20, %s1154_s15  ;;  %s1159_s9 = sshll.u32 %s1409_s8, 4  ;;  %s1160_s9 = int_to_ptr.vmem [resolvable:$false] %s1159_s9 }
  0x2f   : > { %s1161_s17 = scalar_lea.vmem %s1160_s9, 256  ;;  %p1162_p3 = scmp.lt.s32.totalorder %s1528_s20, %s1160_s9 }
  0x30   : > { %p1157_p8 = pnand %p1155_p6, %p1536_p9  ;;  %p1163_p1 = scmp.lt.s32.totalorder %s1161_s17, %s1154_s15 }
  0x32   : > { %p1158_p10 = pneg %p1157_p8  ;;  %p1164_p12 = por %p1163_p1, %p1162_p3 }
  0x34   : > { %p1165_p13 = pnand %p1164_p12, %p1158_p10 }
  0x36   : > { %1168 = shalt.err (!%p1165_p13)
}
  0x37   : > { %1067 = dma.hbm_to_vmem [thread:$0]  (!%p1513_p7), %s1525_s18, 128, %s1528_s20, %s1530_s21  }
  0x38   : > { %s1561_s22 = sadd.s32 4294967295, %s1407_s29   ;;  %s1871_s16 = sadd.s32 4294967294, %s1407_s29  }
  0x39   : > { %p65_p1 = scmp.ne.s32.totalorder %s1391_s25, %s1387_s24  ;;  %p1879_p3 = scmp.eq.s32.totalorder %s1561_s22, 0 }
  0x3a   : > { %p189_p11 = scmp.eq.s32.totalorder %s1561_s22, 1  ;;  %p195_p0 = scmp.eq.s32.totalorder %s1871_s16, 1 }
  0x3b   : > { %p942_p2 = scmp.ge.s32.totalorder %s1407_s29, 1  ;;  %p1573_p4 = por %p1879_p3, %p65_p1 }
  0x3c   : > { %p1905_p5 = scmp.ne.s32.totalorder %s1395_s26, %s1391_s25  ;;  %p1584_p8 = por %p195_p0, %p65_p1 }
  0x3d   : > { %s1904_s19 = scalar_select %p1573_p4, 1, 0 }
  0x3e   : > { %p1580_p6 = por %p189_p11, %p1905_p5  ;;  %p258_p10 = scmp.lt.s32.totalorder %s1407_s29, 3 }
  0x3f   : > { %s1908_s20 = scalar_select %p1584_p8, 1, 0 }
  0x40   : > { %s1906_s18 = scalar_select %p1580_p6, 1, 0 }
  0x41   : > { %1909 = sst [smem:[#allocation25_spill]] %s1908_s20  ;;  %p1589_p12 = pnand %p942_p2, %p258_p10 }
  0x42   : > { %1907 = sst [smem:[#allocation24_spill]] %s1906_s18  ;;  %s1410_s8 = smov [#allocation8]  }
  0x43   : > { %s1910_s15 = scalar_select %p1589_p12, 1, 0 }
  0x44   : > { %s270_s9 = sshll.u32 %s1410_s8, 4  ;;  %p1057_p13 = pneg %p1589_p12  ;;  %s1593_s9 = int_to_ptr.vmem [resolvable:$true] %s270_s9 }
  0x45   : > { %s1607_s1 = scalar_lea.hbm %s1862_s0, %s1511_s12  ;;  %s291_s30 = scalar_lea.vmem [#allocation2], %s1508_s11 }
  0x46   : > { %p1599_p11 = pnand %p1057_p13, %p1879_p3  ;;  %s299_s28 = sshll.u32 %s291_s30, 4  ;;  %s1610_s28 = int_to_ptr.vmem [resolvable:$true] %s299_s28 }
  0x47   : > { %s1169_s29 = scalar_lea.hbm %s1865_s3, 1536 }
  0x48   : > { %p1170_p1 = scmp.ne.s32.totalorder %s1865_s3, %s1169_s29  ;;  %p1171_p0 = pneg %p1599_p11 }
  0x49   : > { %p1176_p10 = scmp.lt.u32.totalorder %s1169_s29, %s1865_s3 }
  0x4a   : > { %p1172_p2 = pnand %p1171_p0, %p1170_p1 }
  0x4c   : > { %p1173_p5 = pneg %p1172_p2 }
  0x4e   : > { %p1178_p13 = pnand %p1176_p10, %p1173_p5 }
  0x50   : > { %1181 = shalt.err (!%p1178_p13)
}
  0x51   : > { %s1182_s30 = scalar_lea.vmem %s1593_s9, 1536  ;;  %p1190_p4 = scmp.lt.s32.totalorder %s1593_s9, %s1593_s9 }
  0x52   : > { %p1183_p3 = scmp.ne.s32.totalorder %s1593_s9, %s1182_s30  ;;  %p1191_p12 = scmp.lt.s32.totalorder %s1182_s30, %s1182_s30 }
  0x54   : > { %p1185_p8 = pnand %p1183_p3, %p1171_p0  ;;  %p1192_p7 = por %p1191_p12, %p1190_p4 }
  0x56   : > { %p1186_p6 = pneg %p1185_p8 }
  0x58   : > { %p1193_p9 = pnand %p1192_p7, %p1186_p6 }
  0x5a   : > { %1196 = shalt.err (!%p1193_p9)
}
  0x5b   : > { %s1411_s24 = smov 128   ;;  %s1412_s29 = smov 8  }
  0x5c   : > { %1060 = dma.hbm_to_vmem [thread:$0]  (!%p1599_p11), %s1865_s3, 1536, %s1593_s9, [#allocation9], %s1411_s24, %s1411_s24, %s1412_s29  }
  0x5d   : > { %s1912_s8 = sand.u32 1, %s1395_s26   ;;  %s1197_s16 = scalar_lea.hbm %s1607_s1, 128 }
  0x5e   : > { %s288_s10 = scalar_lea.sflag [#allocation3], %s1912_s8  ;;  %p1198_p7 = scmp.ne.s32.totalorder %s1607_s1, %s1197_s16 }
  0x5f   : > { %p1913_p9 = scmp.ne.s32.totalorder %s1903_s23, 0  ;;  %s1202_s5 = scalar_lea.hbm %s1862_s0, 256 }
  0x60   : > { %p1203_p6 = scmp.lt.u32.totalorder %s1607_s1, %s1862_s0  ;;  %p1204_p8 = scmp.lt.u32.totalorder %s1202_s5, %s1197_s16 }
  0x61   : > { %p1200_p3 = pnand %p1198_p7, %p1913_p9  ;;  %p1206_p1 = scmp.lt.u32.totalorder %s1197_s16, %s1607_s1 }
  0x62   : > { %p1205_p12 = por %p1204_p8, %p1203_p6 }
  0x63   : > { %p1201_p4 = pneg %p1200_p3 }
  0x64   : > { %p1207_p0 = por %p1206_p1, %p1205_p12 }
  0x66   : > { %p1208_p11 = pnand %p1207_p0, %p1201_p4 }
  0x68   : > { %1211 = shalt.err (!%p1208_p11)
}
  0x69   : > { %s1212_s9 = scalar_lea.vmem %s1610_s28, 128  ;;  %s1413_s7 = smov [#allocation2]  }
  0x6a   : > { %p1213_p2 = scmp.ne.s32.totalorder %s1610_s28, %s1212_s9  ;;  %s1217_s17 = sshll.u32 %s1413_s7, 4  ;;  %s1218_s17 = int_to_ptr.vmem [resolvable:$false] %s1217_s17 }
  0x6b   : > { %s1219_s6 = scalar_lea.vmem %s1218_s17, 256  ;;  %p1220_p13 = scmp.lt.s32.totalorder %s1610_s28, %s1218_s17 }
  0x6c   : > { %p1215_p5 = pnand %p1213_p2, %p1913_p9  ;;  %p1221_p7 = scmp.lt.s32.totalorder %s1219_s6, %s1212_s9 }
  0x6e   : > { %p1216_p10 = pneg %p1215_p5  ;;  %p1222_p3 = por %p1221_p7, %p1220_p13 }
  0x70   : > { %p1223_p6 = pnand %p1222_p3, %p1216_p10 }
  0x72   : > { %1226 = shalt.err (!%p1223_p6)
}
  0x73   : > { %p1914_p4 = scmp.ne.s32.totalorder %s1900_s13, 0  ;;  %s1660_s24 = scalar_lea.hbm %s1864_s2, %s1511_s12 }
  0x74   : > { %s329_s29 = scalar_lea.vmem [#allocation7], %s1508_s11  ;;  %s1227_s20 = scalar_lea.hbm %s1660_s24, 128 }
  0x75   : > { %1064 = dma.hbm_to_vmem [thread:$0]  (!%p1914_p4), %s1607_s1, 128, %s1610_s28, %s288_s10  }
  0x76   : > { %s337_s14 = sshll.u32 %s329_s29, 4  ;;  %p1228_p8 = scmp.ne.s32.totalorder %s1660_s24, %s1227_s20  ;;  %s338_s14 = int_to_ptr.vmem [resolvable:$true] %s337_s14 }
  0x77   : > { %s1232_s1 = scalar_lea.hbm %s1864_s2, 256  ;;  %p1233_p0 = scmp.lt.u32.totalorder %s1660_s24, %s1864_s2 }
  0x78   : > { %p1230_p12 = pnand %p1228_p8, %p1913_p9  ;;  %p1234_p11 = scmp.lt.u32.totalorder %s1232_s1, %s1227_s20 }
  0x79   : > { %p1236_p5 = scmp.lt.u32.totalorder %s1227_s20, %s1660_s24 }
  0x7a   : > { %p1231_p1 = pneg %p1230_p12  ;;  %p1235_p2 = por %p1234_p11, %p1233_p0 }
  0x7c   : > { %p1237_p10 = por %p1236_p5, %p1235_p2 }
  0x7e   : > { %p1238_p13 = pnand %p1237_p10, %p1231_p1 }
  0x80   : > { %1241 = shalt.err (!%p1238_p13)
}
  0x81   : > { %s1242_s11 = scalar_lea.vmem %s338_s14, 128  ;;  %s1414_s12 = smov [#allocation7]  }
  0x82   : > { %p1243_p7 = scmp.ne.s32.totalorder %s338_s14, %s1242_s11  ;;  %s1247_s30 = sshll.u32 %s1414_s12, 4  ;;  %s1248_s30 = int_to_ptr.vmem [resolvable:$false] %s1247_s30 }
  0x83   : > { %s1249_s9 = scalar_lea.vmem %s1248_s30, 256  ;;  %p1250_p8 = scmp.lt.s32.totalorder %s338_s14, %s1248_s30 }
  0x84   : > { %p1245_p3 = pnand %p1243_p7, %p1913_p9  ;;  %p1251_p12 = scmp.lt.s32.totalorder %s1249_s9, %s1242_s11 }
  0x86   : > { %p1246_p6 = pneg %p1245_p3  ;;  %p1252_p4 = por %p1251_p12, %p1250_p8 }
  0x88   : > { %p1253_p0 = pnand %p1252_p4, %p1246_p6 }
  0x8a   : > { %1256 = shalt.err (!%p1253_p0)
}
  0x8b   : > { %p1915_p11 = scmp.ne.s32.totalorder %s1900_s13, 0  ;;  %p1916_p1 = scmp.ne.s32.totalorder %s1910_s15, 0 }
  0x8c   : > { %s1684_s23 = sand.u32 (!%p1916_p1), 1, %s1391_s25   ;;  %p1917_p9 = scmp.ne.s32.totalorder (!%p1916_p1), %s1904_s19, 0 }
  0x8d   : > { %1070 = dma.hbm_to_vmem [thread:$0]  (!%p1915_p11), %s1660_s24, 128, %s338_s14, %s1530_s21  }
  0x8e   : > { %346 = sbr.rel (%p1916_p1) target bundleno = 442 (0x1ba), region = 40  ;;  %s1687_s7 = sshll.u32 (!%p1916_p1), %s1684_s23, 3 }
  0x8f   : > { %s349_s17 = scalar_lea.sflag (!%p1916_p1), [#allocation3], %s1684_s23  ;;  %s352_s6 = scalar_lea.vmem (!%p1916_p1), [#allocation2], %s1687_s7 }
  0x95   : > { %1366 = dma.done.wait (%p1917_p9), %s349_s17, 128  }
  0x96   : > { %1368 = vsyncadd (%p1917_p9), %s349_s17, 4294967168  ;;  %s357_s13 = sand.u32 1, %s1561_s22   ;;  %s361_s15 = scalar_lea.vmem [#allocation5], %s1687_s7 }
  0x97   : > { %s358_s21 = scalar_lea.sflag [#allocation6], %s357_s13 }
  0x98   : > { %1370 = dma.done.wait (%p1917_p9), %s358_s21, 256  }
  0x99   : > { %1372 = vsyncadd (%p1917_p9), %s358_s21, 4294967040  ;;  %s370_s5 = scalar_lea.vmem [#allocation7], %s1687_s7  ;;  %p1918_p4 = scmp.eq.s32.totalorder %s1561_s22, 0 }
  0x9b   : > { %1374 = dma.done.wait (%p1918_p4), [#allocation9], 1536   ;;  %p1919_p2 = pmov %p1918_p4 }
  0x9c   : > { %v1415_v0 = vmov 0.0|0.0   ;;  %vm1416_vm0 = vmmov 0   ;;  %v1417_v1 = vmov 0.0   ;;  %v428_v2 = vld [vmem:[#allocation8] sm:$0xff]  ;;  %v429_v3 = vld [vmem:[#allocation8 + $0x8] sm:$0xff]  ;;  %v430_v4 = vld [vmem:[#allocation8 + $0x10] sm:$0xff] }
  0x9d   : > { %1376 = vsyncadd (%p1919_p2), [#allocation9], 4294965760  ;;  %1023 = vmatprep.subr.bf16.mxu0 %v1415_v0  ;;  %1029 = vmatprep.subr.bf16.mxu1 %v1415_v0  ;;  %v1024_v5 = vpack.c.bf16 %v429_v3, %v428_v2  ;;  %v431_v6 = vld [vmem:[#allocation8 + $0x18] sm:$0xff]  ;;  %v514_v7 = vld [vmem:[#allocation8 + $0x20] sm:$0xff]  ;;  %vm439_vm1 = vcmask 261120   ;;  %s1724_s24 = sshll.u32 %s1399_s27, 7 }
  0x9e   : > { %998 = vmatprep.mubr.msk.f32.mxu0 %vm1416_vm0, %v1417_v1  ;;  %1009 = vmatprep.mubr.msk.f32.mxu1 %vm1416_vm0, %v1417_v1  ;;  %v515_v8 = vld [vmem:[#allocation8 + $0x28] sm:$0xff]  ;;  %v1027_v10 = vpack.c.bf16 %v431_v6, %v430_v4  ;;  %v516_v11 = vld [vmem:[#allocation8 + $0x30] sm:$0xff]  ;;  %v517_v12 = vld [vmem:[#allocation8 + $0x38] sm:$0xff]  ;;  %s417_s20 = scalar_lea.vmem [#allocation11], %s1687_s7  ;;  %s410_s16 = scalar_lea.vmem [#allocation10], %s1687_s7 }
  0x9f   : > { %v1030_v9 = vpack.c.bf16 %v515_v8, %v514_v7  ;;  %1025 = vmatpush3.bf16.msra.mxu0 %v1024_v5  ;;  %v600_v13 = vld [vmem:[#allocation8 + $0x40] sm:$0xff]  ;;  %v601_v14 = vld [vmem:[#allocation8 + $0x48] sm:$0xff]  ;;  %v1033_v15 = vpack.c.bf16 %v517_v12, %v516_v11  ;;  %v425_v16 = vld [vmem:[%s352_s6] sm:$0xff]  ;;  %s728_s8 = sshll.u32 %s417_s20, 4  ;;  %s714_s1 = sshll.u32 %s410_s16, 4  ;;  %s1739_s8 = int_to_ptr.vmem [resolvable:$true] %s728_s8  ;;  %s1747_s1 = int_to_ptr.vmem [resolvable:$true] %s714_s1 }
  0xa0   : > { %1026 = vmatprep.subr.bf16.mxu0 %v1415_v0  ;;  %v1036_v17 = vpack.c.bf16 %v601_v14, %v600_v13  ;;  %v602_v18 = vld [vmem:[#allocation8 + $0x50] sm:$0xff]  ;;  %v603_v19 = vld [vmem:[#allocation8 + $0x58] sm:$0xff]  ;;  %v426_v20 = vld [vmem:[%s361_s15] sm:$0xff]  ;;  %s1920_s28 = sld [smem:[#allocation24_spill]]  ;;  %s1921_s11 = sld [smem:[#allocation28_spill]] }
  0xa1   : > { %1031 = vmatpush3.bf16.msra.mxu1 %v1030_v9  ;;  %v1039_v21 = vpack.c.bf16 %v603_v19, %v602_v18  ;;  %v427_v22 = vld [vmem:[%s370_s5] sm:$0xff]  ;;  %s1922_s17 = sld [smem:[#allocation27_spill]]  ;;  %s424_s21 = scalar_lea.vmem [#allocation13], %s1687_s7 }
  0xa2   : > { %1032 = vmatprep.subr.bf16.mxu1 %v1415_v0  ;;  %v959_v23 = vld [vmem:[%s1866_s4] ss:$0 sm:$0xff]  ;;  %v962_v24 = vld [vmem:[%s1866_s4 + $0x1] ss:$0 sm:$0xff]  ;;  %s1753_s15 = sshll.u32 %s424_s21, 4  ;;  %s1757_s5 = scalar_lea.sflag [#allocation12], %s357_s13  ;;  %s743_s15 = int_to_ptr.vmem [resolvable:$true] %s1753_s15 }
  0xa3   : > { %1028 = vmatpush3.bf16.msra.mxu0 %v1027_v10  ;;  %s1257_s19 = scalar_lea.vmem %s1739_s8, 128  ;;  %s1418_s18 = smov [#allocation11]  }
  0xa4   : > { %1035 = vmatprep.subr.bf16.mxu0 %v1415_v0  ;;  %p1258_p5 = scmp.ne.s32.totalorder %s1739_s8, %s1257_s19  ;;  %s1261_s29 = sshll.u32 %s1418_s18, 4  ;;  %s1262_s29 = int_to_ptr.vmem [resolvable:$false] %s1261_s29 }
  0xa5   : > { %1034 = vmatpush3.bf16.msra.mxu1 %v1033_v15  ;;  %s1263_s14 = scalar_lea.vmem %s1262_s29, 256  ;;  %p1264_p3 = scmp.lt.s32.totalorder %s1739_s8, %s1262_s29 }
  0xa6   : > { %999 = vmatmul.mubr.msk.f32.vlgmr.msra.gmra.mrb[0].mxu0 %vm439_vm1, %v425_v16  ;;  %s1737_s12 = scalar_lea.hbm %s1921_s11, %s1724_s24  ;;  %p1923_p10 = scmp.ne.s32.totalorder %s1920_s28, 0 }
  0xa7   : > { %1037 = vmatpush3.bf16.msra.mxu0 %v1036_v17  ;;  %1020 = vmatprep.mubr.msk.f32.mxu0 %vm1416_vm0, %v1417_v1  ;;  %s1745_s6 = scalar_lea.hbm %s1922_s17, %s1724_s24  ;;  %p1265_p6 = scmp.lt.s32.totalorder %s1263_s14, %s1257_s19 }
  0xa8   : > { %1010 = vmatmul.mubr.msk.f32.vlgmr.msra.gmra.mrb[0].mxu1 %vm439_vm1, %v426_v20  ;;  %1038 = vmatprep.subr.bf16.mxu0 %v1415_v0  ;;  %p1259_p13 = pnand %p1258_p5, %p1923_p10 }
  0xa9   : > { %p1266_p8 = por %p1265_p6, %p1264_p3 }
  0xaa   : > { %p1260_p7 = pneg %p1259_p13 }
  0xab   : > { %1040 = vmatpush3.bf16.msra.mxu0 %v1039_v21 }
  0xac   : > { %p1267_p12 = pnand %p1266_p8, %p1260_p7 }
  0xae   : > { %1021 = vmatmul.mubr.msk.f32.vlgmr.msra.gmra.mrb[2].mxu0 %vm439_vm1, %v427_v22 }
 0x179   : > { %v509_v25 = vpop.f32.mrb[0].mxu0 }
 0x17a   : > { %v510_v26 = vadd.f32 %v959_v23, %v509_v25  ;;  %v1000_v27 = vpop.f32.mrb[1].mxu0 }
 0x17b   : > { %v595_v28 = vpop.f32.mrb[0].mxu1 }
 0x17c   : > { %v596_v29 = vadd.f32 %v962_v24, %v595_v28  ;;  %v1011_v30 = vpop.f32.mrb[1].mxu1  ;;  %v685_v31 = vmul.f32 0.35355338, %v510_v26 }
 0x17e   : > { %687 = vst.msk [vmem:[%s417_s20] sm:$0xff] %vm439_vm1, %v596_v29 }
 0x17f   : > { %1270 = shalt.err (!%p1267_p12)
}
 0x180   : > { %s1271_s22 = scalar_lea.hbm %s1737_s12, 128  ;;  %s1275_s27 = scalar_lea.hbm %s1921_s11, 256 }
 0x181   : > { %p1272_p0 = scmp.ne.s32.totalorder %s1737_s12, %s1271_s22  ;;  %p1276_p9 = scmp.lt.u32.totalorder %s1737_s12, %s1921_s11 }
 0x182   : > { %p1277_p4 = scmp.lt.u32.totalorder %s1275_s27, %s1271_s22  ;;  %p1279_p5 = scmp.lt.u32.totalorder %s1271_s22, %s1737_s12 }
 0x183   : > { %p1273_p11 = pnand %p1272_p0, %p1923_p10 }
 0x184   : > { %p1278_p2 = por %p1277_p4, %p1276_p9 }
 0x185   : > { %p1274_p1 = pneg %p1273_p11 }
 0x186   : > { %p1280_p13 = por %p1279_p5, %p1278_p2 }
 0x188   : > { %p1281_p7 = pnand %p1280_p13, %p1274_p1 }
 0x18a   : > { %1284 = shalt.err (!%p1281_p7)
}
 0x18b   : > { %1052 = dma.vmem_to_hbm [thread:$0]  (%p1923_p10), %s1739_s8, 128, %s1737_s12, %s1757_s5   ;;  %686 = vst.msk [vmem:[%s410_s16] sm:$0xff] %vm439_vm1, %v685_v31  ;;  %v965_v32 = vld [vmem:[%s1866_s4 + $0x2] ss:$0 sm:$0xff] }
 0x18c   : > { %s690_s18 = scalar_lea.sflag [#allocation4], %s1684_s23  ;;  %s1285_s29 = scalar_lea.vmem %s1747_s1, 128 }
 0x18d   : > { %p1286_p3 = scmp.ne.s32.totalorder %s1747_s1, %s1285_s29  ;;  %s1419_s14 = smov [#allocation10]  }
 0x18e   : > { %s1289_s22 = sshll.u32 %s1419_s14, 4  ;;  %s1290_s22 = int_to_ptr.vmem [resolvable:$false] %s1289_s22 }
 0x18f   : > { %p1287_p6 = pnand %p1286_p3, %p1923_p10  ;;  %s1291_s13 = scalar_lea.vmem %s1290_s22, 256 }
 0x190   : > { %p1292_p12 = scmp.lt.s32.totalorder %s1747_s1, %s1290_s22  ;;  %p1293_p0 = scmp.lt.s32.totalorder %s1291_s13, %s1285_s29 }
 0x191   : > { %p1288_p8 = pneg %p1287_p6 }
 0x192   : > { %p1294_p11 = por %p1293_p0, %p1292_p12 }
 0x194   : > { %p1295_p1 = pnand %p1294_p11, %p1288_p8 }
 0x196   : > { %1298 = shalt.err (!%p1295_p1)
}
 0x197   : > { %s1299_s23 = scalar_lea.hbm %s1745_s6, 128  ;;  %s1303_s12 = scalar_lea.hbm %s1922_s17, 256 }
 0x198   : > { %p1300_p9 = scmp.ne.s32.totalorder %s1745_s6, %s1299_s23  ;;  %p1304_p5 = scmp.lt.u32.totalorder %s1745_s6, %s1922_s17 }
 0x199   : > { %p1305_p13 = scmp.lt.u32.totalorder %s1303_s12, %s1299_s23  ;;  %p1307_p3 = scmp.lt.u32.totalorder %s1299_s23, %s1745_s6 }
 0x19a   : > { %p1301_p4 = pnand %p1300_p9, %p1923_p10 }
 0x19b   : > { %p1306_p7 = por %p1305_p13, %p1304_p5 }
 0x19c   : > { %p1302_p2 = pneg %p1301_p4 }
 0x19d   : > { %p1308_p6 = por %p1307_p3, %p1306_p7 }
 0x19f   : > { %p1309_p8 = pnand %p1308_p6, %p1302_p2 }
 0x1a1   : > { %1312 = shalt.err (!%p1309_p8)
}
 0x1a2   : > { %1051 = dma.vmem_to_hbm [thread:$0]  (%p1923_p10), %s1747_s1, 128, %s1745_s6, %s690_s18   ;;  %v681_v33 = vpop.f32.mrb[2].mxu0 }
 0x1a3   : > { %v682_v34 = vadd.f32 %v965_v32, %v681_v33  ;;  %v1022_v35 = vpop.f32.mrb[3].mxu0  ;;  %s1924_s9 = sld [smem:[#allocation29_spill]]  ;;  %s1313_s29 = scalar_lea.vmem %s743_s15, 128 }
 0x1a4   : > { %p1314_p12 = scmp.ne.s32.totalorder %s743_s15, %s1313_s29  ;;  %s1420_s14 = smov [#allocation13]  }
 0x1a5   : > { %688 = vst.msk [vmem:[%s424_s21] sm:$0xff] %vm439_vm1, %v682_v34  ;;  %s1317_s22 = sshll.u32 %s1420_s14, 4  ;;  %s1318_s22 = int_to_ptr.vmem [resolvable:$false] %s1317_s22 }
 0x1a6   : > { %p1315_p0 = pnand %p1314_p12, %p1923_p10  ;;  %s1319_s1 = scalar_lea.vmem %s1318_s22, 256 }
 0x1a7   : > { %p1320_p1 = scmp.lt.s32.totalorder %s743_s15, %s1318_s22  ;;  %p1321_p9 = scmp.lt.s32.totalorder %s1319_s1, %s1313_s29 }
 0x1a8   : > { %p1316_p11 = pneg %p1315_p0 }
 0x1a9   : > { %s1813_s19 = scalar_lea.hbm %s1924_s9, %s1724_s24  ;;  %p1322_p4 = por %p1321_p9, %p1320_p1 }
 0x1ab   : > { %p1323_p2 = pnand %p1322_p4, %p1316_p11 }
 0x1ad   : > { %1326 = shalt.err (!%p1323_p2)
}
 0x1ae   : > { %s1327_s7 = scalar_lea.hbm %s1813_s19, 128  ;;  %s1331_s21 = scalar_lea.hbm %s1924_s9, 256 }
 0x1af   : > { %p1328_p5 = scmp.ne.s32.totalorder %s1813_s19, %s1327_s7  ;;  %p1332_p3 = scmp.lt.u32.totalorder %s1813_s19, %s1924_s9 }
 0x1b0   : > { %p1333_p6 = scmp.lt.u32.totalorder %s1331_s21, %s1327_s7  ;;  %p1335_p12 = scmp.lt.u32.totalorder %s1327_s7, %s1813_s19 }
 0x1b1   : > { %p1329_p13 = pnand %p1328_p5, %p1923_p10 }
 0x1b2   : > { %p1334_p8 = por %p1333_p6, %p1332_p3 }
 0x1b3   : > { %p1330_p7 = pneg %p1329_p13 }
 0x1b4   : > { %p1336_p0 = por %p1335_p12, %p1334_p8 }
 0x1b6   : > { %p1337_p11 = pnand %p1336_p0, %p1330_p7 }
 0x1b8   : > { %1340 = shalt.err (!%p1337_p11)
}
 0x1b9   : > { %1053 = dma.vmem_to_hbm [thread:$0]  (%p1923_p10), %s743_s15, 128, %s1813_s19, %s1757_s5  }
 0x1ba PF: > { %s1925_s23 = sld [smem:[#allocation19_spill]]  ;;  %s1926_s8 = sld [smem:[#allocation25_spill]] }
 0x1bb   : > { %s1927_s16 = sld [smem:[#allocation21_spill]] }
 0x1c0   : > { %s754_s12 = sand.u32 1, %s1925_s23   ;;  %p1928_p1 = scmp.ne.s32.totalorder %s1926_s8, 0 }
 0x1c1   : > { %p1929_p9 = scmp.ge.s32.totalorder %s1927_s16, 2  ;;  %s755_s20 = scalar_lea.sflag [#allocation4], %s754_s12 }
 0x1c3   : > { %p1072_p4 = pnand %p1929_p9, %p1928_p1 }
 0x1c5   : > { %1378 = dma.done.wait (!%p1072_p4), %s755_s20, 128  }
 0x1c6   : > { %1380 = vsyncadd (!%p1072_p4), %s755_s20, 4294967168  ;;  %s1930_s27 = sadd.s32 4294967294, %s1927_s16  }
 0x1c7   : > { %s763_s10 = sand.u32 1, %s1930_s27  }
 0x1c8   : > { %s764_s30 = scalar_lea.sflag [#allocation12], %s763_s10 }
 0x1c9   : > { %1382 = dma.done.wait (!%p1072_p4), %s764_s30, 256  }
 0x1ca   : > { %1384 = vsyncadd (!%p1072_p4), %s764_s30, 4294967040  ;;  %s31_s29 = sadd.s32 1, %s1927_s16   ;;  %s1931_s28 = sld [smem:[#allocation23_spill]] }
 0x1cb   : > { %p28_p10 = scmp.ge.s32.totalorder %s31_s29, 4   ;;  %s1932_s27 = sld [smem:[#allocation20_spill]] }
 0x1cc   : > { %s1933_s15 = sld [smem:[#allocation22_spill]]  ;;  %s1934_s24 = smov %s1391_s25 }
 0x1cd   : > { %s1935_s25 = smov %s1395_s26  ;;  %30 = sbr.rel (!%p28_p10) target bundleno = 16 (0x10), region = 149 }
 0x1d0   : > { %s1936_s26 = smov %s1931_s28 }
 0x1d2   : > { %s1937_s28 = smov %s1933_s15 }
 0x1d4   :  { %778 = vsyncpa [#allocation3], 1 }
 0x1d5   :  { %780 = vsyncpa [#allocation3 + $0x1], 1 }
 0x1d6   :  { %781 = vsyncpa [#allocation6], 1 }
 0x1d7   :  { %783 = vsyncpa [#allocation6 + $0x1], 1 }
 0x1d8   :  { %784 = vsyncpa [#allocation9], 1 }
 0x1d9   :  { %785 = vsyncpa [#allocation4], 1 }
 0x1da   :  { %787 = vsyncpa [#allocation4 + $0x1], 1 }
 0x1db   :  { %788 = vsyncpa [#allocation12], 1 }
 0x1dc   :  { %790 = vsyncpa [#allocation12 + $0x1], 1 }

// kernel: tpu_custom_call.1
= control target key start
LH: loop header
LB: loop body
LE: loop exit
PB: predicated region body
PF: predicated region fallthrough
CT: control target
= control target key end

     0   :  { %s1862_s0 = inlined_call_operand.hbm [shape: f32[2,8,32], index: 0, kind: input, shape index: {}]   ;;  %s1863_s1 = inlined_call_operand.hbm [shape: f32[2,8,32], index: 1, kind: input, shape index: {}]   ;;  %s1864_s2 = inlined_call_operand.hbm [shape: f32[2,8,32], index: 2, kind: input, shape index: {}]   ;;  %s1865_s3 = inlined_call_operand.hbm [shape: f32[3,32,32], index: 3, kind: input, shape index: {}]   ;;  %s1866_s4 = inlined_call_operand.vmem [shape: f32[3,1,32], index: 4, kind: input, shape index: {}]   ;;  %s1867_s5 = inlined_call_operand.hbm [shape: f32[2,8,32], index: 5, kind: output, shape index: {0}]   ;;  %s1868_s6 = inlined_call_operand.hbm [shape: f32[2,8,32], index: 6, kind: output, shape index: {1}]   ;;  %s1869_s7 = inlined_call_operand.hbm [shape: f32[2,8,32], index: 7, kind: output, shape index: {2}]  }
   0x1   :  { %1892 = sst [smem:[#allocation26_spill]] %s1863_s1 }
   0x2   :  { %1893 = sst [smem:[#allocation27_spill]] %s1867_s5 }
   0x3   :  { %1894 = sst [smem:[#allocation28_spill]] %s1868_s6 }
   0x4   :  { %1895 = sst [smem:[#allocation29_spill]] %s1869_s7 }
   0x5   :  { %13 = vsyncpa [#allocation3], 0 }
   0x6   :  { %15 = vsyncpa [#allocation3 + $0x1], 0 }
   0x7   :  { %16 = vsyncpa [#allocation6], 0 }
   0x8   :  { %18 = vsyncpa [#allocation6 + $0x1], 0 }
   0x9   :  { %19 = vsyncpa [#allocation9], 0 }
   0xa   :  { %20 = vsyncpa [#allocation4], 0 }
   0xb   :  { %22 = vsyncpa [#allocation4 + $0x1], 0 }
   0xc   :  { %23 = vsyncpa [#allocation12], 0 }
   0xd   :  { %25 = vsyncpa [#allocation12 + $0x1], 0  ;;  %s1461_s24 = smov 0   ;;  %s1463_s25 = smov 0  }
   0xe   :  { %s1465_s26 = smov 0   ;;  %s1467_s27 = smov 0  }
   0xf   :  { %s1469_s28 = smov 0   ;;  %s1471_s29 = smov 0  }
  0x10 LB: > { %1896 = sst [smem:[#allocation19_spill]] %s1387_s24  ;;  %s43_s30 = sadd.s32 1, %s1403_s28  ;;  %s1407_s29 = sphi %s1471_s29, %s31_s29   ;;  %s1403_s28 = sphi %s1469_s28, %s1937_s28   ;;  %s1399_s27 = sphi %s1467_s27, %s1932_s27   ;;  %s1395_s26 = sphi %s1465_s26, %s1936_s26   ;;  %s1391_s25 = sphi %s1463_s25, %s1935_s25   ;;  %s1387_s24 = sphi %s1461_s24, %s1934_s24  }
  0x11   : > { %1897 = sst [smem:[#allocation20_spill]] %s1403_s28  ;;  %s52_s8 = sadd.s32 1, %s1395_s26 }
  0x12   : > { %1898 = sst [smem:[#allocation21_spill]] %s1407_s29  ;;  %p45_p0 = scmp.ge.s32.totalorder %s43_s30, 2 }
  0x13   : > { %p1870_p1 = scmp.ne.s32.totalorder %s1395_s26, %s1391_s25  ;;  %p60_p2 = scmp.eq.s32.totalorder %s1407_s29, 0 }
  0x14   : > { %s1939_s30 = smov (%p45_p0, %s43_s30), 0  ;;  %p1082_p5 = scmp.lt.s32.totalorder %s1407_s29, 2 }
  0x15   : > { %1899 = sst [smem:[#allocation22_spill]] %s1939_s30  ;;  %p61_p4 = por %p60_p2, %p1870_p1 }
  0x16   : > { %s47_s9 = ssub.s32 %s1403_s28, %s1939_s30  ;;  %s1872_s10 = sand.u32 1, %s1395_s26  }
  0x17   : > { %p50_p6 = scmp.eq.s32.totalorder %s47_s9, 0  ;;  %s1508_s11 = sshll.u32 %s1872_s10, 3 }
  0x18   : > { %s1511_s12 = sshll.u32 %s1403_s28, 7  ;;  %p1513_p7 = pnand %p1082_p5, %p61_p4 }
  0x19   : > { %s1518_s14 = scalar_select %p50_p6, %s1395_s26, %s52_s8  }
  0x1a   : > { %s1900_s13 = scalar_select %p1513_p7, 1, 0 }
  0x1b   : > { %1901 = sst [smem:[#allocation23_spill]] %s1518_s14  ;;  %s306_s15 = sand.u32 1, %s1407_s29  }
  0x1c   : > { %s1902_s1 = sld [smem:[#allocation26_spill]]  ;;  %s310_s19 = scalar_lea.vmem [#allocation5], %s1508_s11 }
  0x1d   : > { %s318_s20 = sshll.u32 %s310_s19, 4  ;;  %s1530_s21 = scalar_lea.sflag [#allocation6], %s306_s15  ;;  %s1528_s20 = int_to_ptr.vmem [resolvable:$true] %s318_s20 }
  0x1e   : > { %p1536_p9 = pneg %p1513_p7 }
  0x20   : > { %s1903_s23 = scalar_select %p1536_p9, 1, 0 }
  0x22   : > { %s1525_s18 = scalar_lea.hbm %s1902_s1, %s1511_s12  ;;  %s1144_s16 = scalar_lea.hbm %s1902_s1, 256 }
  0x23   : > { %s1139_s22 = scalar_lea.hbm %s1525_s18, 128  ;;  %p1145_p12 = scmp.lt.u32.totalorder %s1525_s18, %s1902_s1 }
  0x24   : > { %p1140_p8 = scmp.ne.s32.totalorder %s1525_s18, %s1139_s22  ;;  %p1146_p13 = scmp.lt.u32.totalorder %s1144_s16, %s1139_s22 }
  0x25   : > { %p1148_p2 = scmp.lt.u32.totalorder %s1139_s22, %s1525_s18 }
  0x26   : > { %p1142_p10 = pnand %p1536_p9, %p1140_p8  ;;  %p1147_p0 = por %p1146_p13, %p1145_p12 }
  0x28   : > { %p1143_p11 = pneg %p1142_p10  ;;  %p1149_p4 = por %p1148_p2, %p1147_p0 }
  0x2a   : > { %p1150_p5 = pnand %p1149_p4, %p1143_p11 }
  0x2c   : > { %1153 = shalt.err (!%p1150_p5)
}
  0x2d   : > { %s1154_s15 = scalar_lea.vmem %s1528_s20, 128  ;;  %s1409_s8 = smov [#allocation5]  }
  0x2e   : > { %p1155_p6 = scmp.ne.s32.totalorder %s1528_s20, %s1154_s15  ;;  %s1159_s9 = sshll.u32 %s1409_s8, 4  ;;  %s1160_s9 = int_to_ptr.vmem [resolvable:$false] %s1159_s9 }
  0x2f   : > { %s1161_s17 = scalar_lea.vmem %s1160_s9, 256  ;;  %p1162_p3 = scmp.lt.s32.totalorder %s1528_s20, %s1160_s9 }
  0x30   : > { %p1157_p8 = pnand %p1155_p6, %p1536_p9  ;;  %p1163_p1 = scmp.lt.s32.totalorder %s1161_s17, %s1154_s15 }
  0x32   : > { %p1158_p10 = pneg %p1157_p8  ;;  %p1164_p12 = por %p1163_p1, %p1162_p3 }
  0x34   : > { %p1165_p13 = pnand %p1164_p12, %p1158_p10 }
  0x36   : > { %1168 = shalt.err (!%p1165_p13)
}
  0x37   : > { %1067 = dma.hbm_to_vmem [thread:$0]  (!%p1513_p7), %s1525_s18, 128, %s1528_s20, %s1530_s21  }
  0x38   : > { %s1561_s22 = sadd.s32 4294967295, %s1407_s29   ;;  %s1871_s16 = sadd.s32 4294967294, %s1407_s29  }
  0x39   : > { %p65_p1 = scmp.ne.s32.totalorder %s1391_s25, %s1387_s24  ;;  %p1879_p3 = scmp.eq.s32.totalorder %s1561_s22, 0 }
  0x3a   : > { %p189_p11 = scmp.eq.s32.totalorder %s1561_s22, 1  ;;  %p195_p0 = scmp.eq.s32.totalorder %s1871_s16, 1 }
  0x3b   : > { %p942_p2 = scmp.ge.s32.totalorder %s1407_s29, 1  ;;  %p1573_p4 = por %p1879_p3, %p65_p1 }
  0x3c   : > { %p1905_p5 = scmp.ne.s32.totalorder %s1395_s26, %s1391_s25  ;;  %p1584_p8 = por %p195_p0, %p65_p1 }
  0x3d   : > { %s1904_s19 = scalar_select %p1573_p4, 1, 0 }
  0x3e   : > { %p1580_p6 = por %p189_p11, %p1905_p5  ;;  %p258_p10 = scmp.lt.s32.totalorder %s1407_s29, 3 }
  0x3f   : > { %s1908_s20 = scalar_select %p1584_p8, 1, 0 }
  0x40   : > { %s1906_s18 = scalar_select %p1580_p6, 1, 0 }
  0x41   : > { %1909 = sst [smem:[#allocation25_spill]] %s1908_s20  ;;  %p1589_p12 = pnand %p942_p2, %p258_p10 }
  0x42   : > { %1907 = sst [smem:[#allocation24_spill]] %s1906_s18  ;;  %s1410_s8 = smov [#allocation8]  }
  0x43   : > { %s1910_s15 = scalar_select %p1589_p12, 1, 0 }
  0x44   : > { %s270_s9 = sshll.u32 %s1410_s8, 4  ;;  %p1057_p13 = pneg %p1589_p12  ;;  %s1593_s9 = int_to_ptr.vmem [resolvable:$true] %s270_s9 }
  0x45   : > { %s1607_s1 = scalar_lea.hbm %s1862_s0, %s1511_s12  ;;  %s291_s30 = scalar_lea.vmem [#allocation2], %s1508_s11 }
  0x46   : > { %p1599_p11 = pnand %p1057_p13, %p1879_p3  ;;  %s299_s28 = sshll.u32 %s291_s30, 4  ;;  %s1610_s28 = int_to_ptr.vmem [resolvable:$true] %s299_s28 }
  0x47   : > { %s1169_s29 = scalar_lea.hbm %s1865_s3, 1536 }
  0x48   : > { %p1170_p1 = scmp.ne.s32.totalorder %s1865_s3, %s1169_s29  ;;  %p1171_p0 = pneg %p1599_p11 }
  0x49   : > { %p1176_p10 = scmp.lt.u32.totalorder %s1169_s29, %s1865_s3 }
  0x4a   : > { %p1172_p2 = pnand %p1171_p0, %p1170_p1 }
  0x4c   : > { %p1173_p5 = pneg %p1172_p2 }
  0x4e   : > { %p1178_p13 = pnand %p1176_p10, %p1173_p5 }
  0x50   : > { %1181 = shalt.err (!%p1178_p13)
}
  0x51   : > { %s1182_s30 = scalar_lea.vmem %s1593_s9, 1536  ;;  %p1190_p4 = scmp.lt.s32.totalorder %s1593_s9, %s1593_s9 }
  0x52   : > { %p1183_p3 = scmp.ne.s32.totalorder %s1593_s9, %s1182_s30  ;;  %p1191_p12 = scmp.lt.s32.totalorder %s1182_s30, %s1182_s30 }
  0x54   : > { %p1185_p8 = pnand %p1183_p3, %p1171_p0  ;;  %p1192_p7 = por %p1191_p12, %p1190_p4 }
  0x56   : > { %p1186_p6 = pneg %p1185_p8 }
  0x58   : > { %p1193_p9 = pnand %p1192_p7, %p1186_p6 }
  0x5a   : > { %1196 = shalt.err (!%p1193_p9)
}
  0x5b   : > { %s1411_s24 = smov 128   ;;  %s1412_s29 = smov 8  }
  0x5c   : > { %1060 = dma.hbm_to_vmem [thread:$0]  (!%p1599_p11), %s1865_s3, 1536, %s1593_s9, [#allocation9], %s1411_s24, %s1411_s24, %s1412_s29  }
  0x5d   : > { %s1912_s8 = sand.u32 1, %s1395_s26   ;;  %s1197_s16 = scalar_lea.hbm %s1607_s1, 128 }
  0x5e   : > { %s288_s10 = scalar_lea.sflag [#allocation3], %s1912_s8  ;;  %p1198_p7 = scmp.ne.s32.totalorder %s1607_s1, %s1197_s16 }
  0x5f   : > { %p1913_p9 = scmp.ne.s32.totalorder %s1903_s23, 0  ;;  %s1202_s5 = scalar_lea.hbm %s1862_s0, 256 }
  0x60   : > { %p1203_p6 = scmp.lt.u32.totalorder %s1607_s1, %s1862_s0  ;;  %p1204_p8 = scmp.lt.u32.totalorder %s1202_s5, %s1197_s16 }
  0x61   : > { %p1200_p3 = pnand %p1198_p7, %p1913_p9  ;;  %p1206_p1 = scmp.lt.u32.totalorder %s1197_s16, %s1607_s1 }
  0x62   : > { %p1205_p12 = por %p1204_p8, %p1203_p6 }
  0x63   : > { %p1201_p4 = pneg %p1200_p3 }
  0x64   : > { %p1207_p0 = por %p1206_p1, %p1205_p12 }
  0x66   : > { %p1208_p11 = pnand %p1207_p0, %p1201_p4 }
  0x68   : > { %1211 = shalt.err (!%p1208_p11)
}
  0x69   : > { %s1212_s9 = scalar_lea.vmem %s1610_s28, 128  ;;  %s1413_s7 = smov [#allocation2]  }
  0x6a   : > { %p1213_p2 = scmp.ne.s32.totalorder %s1610_s28, %s1212_s9  ;;  %s1217_s17 = sshll.u32 %s1413_s7, 4  ;;  %s1218_s17 = int_to_ptr.vmem [resolvable:$false] %s1217_s17 }
  0x6b   : > { %s1219_s6 = scalar_lea.vmem %s1218_s17, 256  ;;  %p1220_p13 = scmp.lt.s32.totalorder %s1610_s28, %s1218_s17 }
  0x6c   : > { %p1215_p5 = pnand %p1213_p2, %p1913_p9  ;;  %p1221_p7 = scmp.lt.s32.totalorder %s1219_s6, %s1212_s9 }
  0x6e   : > { %p1216_p10 = pneg %p1215_p5  ;;  %p1222_p3 = por %p1221_p7, %p1220_p13 }
  0x70   : > { %p1223_p6 = pnand %p1222_p3, %p1216_p10 }
  0x72   : > { %1226 = shalt.err (!%p1223_p6)
}
  0x73   : > { %p1914_p4 = scmp.ne.s32.totalorder %s1900_s13, 0  ;;  %s1660_s24 = scalar_lea.hbm %s1864_s2, %s1511_s12 }
  0x74   : > { %s329_s29 = scalar_lea.vmem [#allocation7], %s1508_s11  ;;  %s1227_s20 = scalar_lea.hbm %s1660_s24, 128 }
  0x75   : > { %1064 = dma.hbm_to_vmem [thread:$0]  (!%p1914_p4), %s1607_s1, 128, %s1610_s28, %s288_s10  }
  0x76   : > { %s337_s14 = sshll.u32 %s329_s29, 4  ;;  %p1228_p8 = scmp.ne.s32.totalorder %s1660_s24, %s1227_s20  ;;  %s338_s14 = int_to_ptr.vmem [resolvable:$true] %s337_s14 }
  0x77   : > { %s1232_s1 = scalar_lea.hbm %s1864_s2, 256  ;;  %p1233_p0 = scmp.lt.u32.totalorder %s1660_s24, %s1864_s2 }
  0x78   : > { %p1230_p12 = pnand %p1228_p8, %p1913_p9  ;;  %p1234_p11 = scmp.lt.u32.totalorder %s1232_s1, %s1227_s20 }
  0x79   : > { %p1236_p5 = scmp.lt.u32.totalorder %s1227_s20, %s1660_s24 }
  0x7a   : > { %p1231_p1 = pneg %p1230_p12  ;;  %p1235_p2 = por %p1234_p11, %p1233_p0 }
  0x7c   : > { %p1237_p10 = por %p1236_p5, %p1235_p2 }
  0x7e   : > { %p1238_p13 = pnand %p1237_p10, %p1231_p1 }
  0x80   : > { %1241 = shalt.err (!%p1238_p13)
}
  0x81   : > { %s1242_s11 = scalar_lea.vmem %s338_s14, 128  ;;  %s1414_s12 = smov [#allocation7]  }
  0x82   : > { %p1243_p7 = scmp.ne.s32.totalorder %s338_s14, %s1242_s11  ;;  %s1247_s30 = sshll.u32 %s1414_s12, 4  ;;  %s1248_s30 = int_to_ptr.vmem [resolvable:$false] %s1247_s30 }
  0x83   : > { %s1249_s9 = scalar_lea.vmem %s1248_s30, 256  ;;  %p1250_p8 = scmp.lt.s32.totalorder %s338_s14, %s1248_s30 }
  0x84   : > { %p1245_p3 = pnand %p1243_p7, %p1913_p9  ;;  %p1251_p12 = scmp.lt.s32.totalorder %s1249_s9, %s1242_s11 }
  0x86   : > { %p1246_p6 = pneg %p1245_p3  ;;  %p1252_p4 = por %p1251_p12, %p1250_p8 }
  0x88   : > { %p1253_p0 = pnand %p1252_p4, %p1246_p6 }
  0x8a   : > { %1256 = shalt.err (!%p1253_p0)
}
  0x8b   : > { %p1915_p11 = scmp.ne.s32.totalorder %s1900_s13, 0  ;;  %p1916_p1 = scmp.ne.s32.totalorder %s1910_s15, 0 }
  0x8c   : > { %s1684_s23 = sand.u32 (!%p1916_p1), 1, %s1391_s25   ;;  %p1917_p9 = scmp.ne.s32.totalorder (!%p1916_p1), %s1904_s19, 0 }
  0x8d   : > { %1070 = dma.hbm_to_vmem [thread:$0]  (!%p1915_p11), %s1660_s24, 128, %s338_s14, %s1530_s21  }
  0x8e   : > { %346 = sbr.rel (%p1916_p1) target bundleno = 442 (0x1ba), region = 40  ;;  %s1687_s7 = sshll.u32 (!%p1916_p1), %s1684_s23, 3 }
  0x8f   : > { %s349_s17 = scalar_lea.sflag (!%p1916_p1), [#allocation3], %s1684_s23  ;;  %s352_s6 = scalar_lea.vmem (!%p1916_p1), [#allocation2], %s1687_s7 }
  0x95   : > { %1366 = dma.done.wait (%p1917_p9), %s349_s17, 128  }
  0x96   : > { %1368 = vsyncadd (%p1917_p9), %s349_s17, 4294967168  ;;  %s357_s13 = sand.u32 1, %s1561_s22   ;;  %s361_s15 = scalar_lea.vmem [#allocation5], %s1687_s7 }
  0x97   : > { %s358_s21 = scalar_lea.sflag [#allocation6], %s357_s13 }
  0x98   : > { %1370 = dma.done.wait (%p1917_p9), %s358_s21, 256  }
  0x99   : > { %1372 = vsyncadd (%p1917_p9), %s358_s21, 4294967040  ;;  %s370_s5 = scalar_lea.vmem [#allocation7], %s1687_s7  ;;  %p1918_p4 = scmp.eq.s32.totalorder %s1561_s22, 0 }
  0x9b   : > { %1374 = dma.done.wait (%p1918_p4), [#allocation9], 1536   ;;  %p1919_p2 = pmov %p1918_p4 }
  0x9c   : > { %v1415_v0 = vmov 0.0|0.0   ;;  %vm1416_vm0 = vmmov 0   ;;  %v1417_v1 = vmov 0.0   ;;  %v428_v2 = vld [vmem:[#allocation8] sm:$0xff]  ;;  %v429_v3 = vld [vmem:[#allocation8 + $0x8] sm:$0xff]  ;;  %v430_v4 = vld [vmem:[#allocation8 + $0x10] sm:$0xff] }
  0x9d   : > { %1376 = vsyncadd (%p1919_p2), [#allocation9], 4294965760  ;;  %1023 = vmatprep.subr.bf16.mxu0 %v1415_v0  ;;  %1029 = vmatprep.subr.bf16.mxu1 %v1415_v0  ;;  %v1024_v5 = vpack.c.bf16 %v429_v3, %v428_v2  ;;  %v431_v6 = vld [vmem:[#allocation8 + $0x18] sm:$0xff]  ;;  %v514_v7 = vld [vmem:[#allocation8 + $0x20] sm:$0xff]  ;;  %vm439_vm1 = vcmask 261120   ;;  %s1724_s24 = sshll.u32 %s1399_s27, 7 }
  0x9e   : > { %998 = vmatprep.mubr.msk.f32.mxu0 %vm1416_vm0, %v1417_v1  ;;  %1009 = vmatprep.mubr.msk.f32.mxu1 %vm1416_vm0, %v1417_v1  ;;  %v515_v8 = vld [vmem:[#allocation8 + $0x28] sm:$0xff]  ;;  %v1027_v10 = vpack.c.bf16 %v431_v6, %v430_v4  ;;  %v516_v11 = vld [vmem:[#allocation8 + $0x30] sm:$0xff]  ;;  %v517_v12 = vld [vmem:[#allocation8 + $0x38] sm:$0xff]  ;;  %s417_s20 = scalar_lea.vmem [#allocation11], %s1687_s7  ;;  %s410_s16 = scalar_lea.vmem [#allocation10], %s1687_s7 }
  0x9f   : > { %v1030_v9 = vpack.c.bf16 %v515_v8, %v514_v7  ;;  %1025 = vmatpush3.bf16.msra.mxu0 %v1024_v5  ;;  %v600_v13 = vld [vmem:[#allocation8 + $0x40] sm:$0xff]  ;;  %v601_v14 = vld [vmem:[#allocation8 + $0x48] sm:$0xff]  ;;  %v1033_v15 = vpack.c.bf16 %v517_v12, %v516_v11  ;;  %v425_v16 = vld [vmem:[%s352_s6] sm:$0xff]  ;;  %s728_s8 = sshll.u32 %s417_s20, 4  ;;  %s714_s1 = sshll.u32 %s410_s16, 4  ;;  %s1739_s8 = int_to_ptr.vmem [resolvable:$true] %s728_s8  ;;  %s1747_s1 = int_to_ptr.vmem [resolvable:$true] %s714_s1 }
  0xa0   : > { %1026 = vmatprep.subr.bf16.mxu0 %v1415_v0  ;;  %v1036_v17 = vpack.c.bf16 %v601_v14, %v600_v13  ;;  %v602_v18 = vld [vmem:[#allocation8 + $0x50] sm:$0xff]  ;;  %v603_v19 = vld [vmem:[#allocation8 + $0x58] sm:$0xff]  ;;  %v426_v20 = vld [vmem:[%s361_s15] sm:$0xff]  ;;  %s1920_s28 = sld [smem:[#allocation24_spill]]  ;;  %s1921_s11 = sld [smem:[#allocation28_spill]] }
  0xa1   : > { %1031 = vmatpush3.bf16.msra.mxu1 %v1030_v9  ;;  %v1039_v21 = vpack.c.bf16 %v603_v19, %v602_v18  ;;  %v427_v22 = vld [vmem:[%s370_s5] sm:$0xff]  ;;  %s1922_s17 = sld [smem:[#allocation27_spill]]  ;;  %s424_s21 = scalar_lea.vmem [#allocation13], %s1687_s7 }
  0xa2   : > { %1032 = vmatprep.subr.bf16.mxu1 %v1415_v0  ;;  %v959_v23 = vld [vmem:[%s1866_s4] ss:$0 sm:$0xff]  ;;  %v962_v24 = vld [vmem:[%s1866_s4 + $0x1] ss:$0 sm:$0xff]  ;;  %s1753_s15 = sshll.u32 %s424_s21, 4  ;;  %s1757_s5 = scalar_lea.sflag [#allocation12], %s357_s13  ;;  %s743_s15 = int_to_ptr.vmem [resolvable:$true] %s1753_s15 }
  0xa3   : > { %1028 = vmatpush3.bf16.msra.mxu0 %v1027_v10  ;;  %s1257_s19 = scalar_lea.vmem %s1739_s8, 128  ;;  %s1418_s18 = smov [#allocation11]  }
  0xa4   : > { %1035 = vmatprep.subr.bf16.mxu0 %v1415_v0  ;;  %p1258_p5 = scmp.ne.s32.totalorder %s1739_s8, %s1257_s19  ;;  %s1261_s29 = sshll.u32 %s1418_s18, 4  ;;  %s1262_s29 = int_to_ptr.vmem [resolvable:$false] %s1261_s29 }
  0xa5   : > { %1034 = vmatpush3.bf16.msra.mxu1 %v1033_v15  ;;  %s1263_s14 = scalar_lea.vmem %s1262_s29, 256  ;;  %p1264_p3 = scmp.lt.s32.totalorder %s1739_s8, %s1262_s29 }
  0xa6   : > { %999 = vmatmul.mubr.msk.f32.vlgmr.msra.gmra.mrb[0].mxu0 %vm439_vm1, %v425_v16  ;;  %s1737_s12 = scalar_lea.hbm %s1921_s11, %s1724_s24  ;;  %p1923_p10 = scmp.ne.s32.totalorder %s1920_s28, 0 }
  0xa7   : > { %1037 = vmatpush3.bf16.msra.mxu0 %v1036_v17  ;;  %1020 = vmatprep.mubr.msk.f32.mxu0 %vm1416_vm0, %v1417_v1  ;;  %s1745_s6 = scalar_lea.hbm %s1922_s17, %s1724_s24  ;;  %p1265_p6 = scmp.lt.s32.totalorder %s1263_s14, %s1257_s19 }
  0xa8   : > { %1010 = vmatmul.mubr.msk.f32.vlgmr.msra.gmra.mrb[0].mxu1 %vm439_vm1, %v426_v20  ;;  %1038 = vmatprep.subr.bf16.mxu0 %v1415_v0  ;;  %p1259_p13 = pnand %p1258_p5, %p1923_p10 }
  0xa9   : > { %p1266_p8 = por %p1265_p6, %p1264_p3 }
  0xaa   : > { %p1260_p7 = pneg %p1259_p13 }
  0xab   : > { %1040 = vmatpush3.bf16.msra.mxu0 %v1039_v21 }
  0xac   : > { %p1267_p12 = pnand %p1266_p8, %p1260_p7 }
  0xae   : > { %1021 = vmatmul.mubr.msk.f32.vlgmr.msra.gmra.mrb[2].mxu0 %vm439_vm1, %v427_v22 }
 0x179   : > { %v509_v25 = vpop.f32.mrb[0].mxu0 }
 0x17a   : > { %v510_v26 = vadd.f32 %v959_v23, %v509_v25  ;;  %v1000_v27 = vpop.f32.mrb[1].mxu0 }
 0x17b   : > { %v595_v28 = vpop.f32.mrb[0].mxu1 }
 0x17c   : > { %v596_v29 = vadd.f32 %v962_v24, %v595_v28  ;;  %v1011_v30 = vpop.f32.mrb[1].mxu1  ;;  %v685_v31 = vmul.f32 0.35355338, %v510_v26 }
 0x17e   : > { %687 = vst.msk [vmem:[%s417_s20] sm:$0xff] %vm439_vm1, %v596_v29 }
 0x17f   : > { %1270 = shalt.err (!%p1267_p12)
}
 0x180   : > { %s1271_s22 = scalar_lea.hbm %s1737_s12, 128  ;;  %s1275_s27 = scalar_lea.hbm %s1921_s11, 256 }
 0x181   : > { %p1272_p0 = scmp.ne.s32.totalorder %s1737_s12, %s1271_s22  ;;  %p1276_p9 = scmp.lt.u32.totalorder %s1737_s12, %s1921_s11 }
 0x182   : > { %p1277_p4 = scmp.lt.u32.totalorder %s1275_s27, %s1271_s22  ;;  %p1279_p5 = scmp.lt.u32.totalorder %s1271_s22, %s1737_s12 }
 0x183   : > { %p1273_p11 = pnand %p1272_p0, %p1923_p10 }
 0x184   : > { %p1278_p2 = por %p1277_p4, %p1276_p9 }
 0x185   : > { %p1274_p1 = pneg %p1273_p11 }
 0x186   : > { %p1280_p13 = por %p1279_p5, %p1278_p2 }
 0x188   : > { %p1281_p7 = pnand %p1280_p13, %p1274_p1 }
 0x18a   : > { %1284 = shalt.err (!%p1281_p7)
}
 0x18b   : > { %1052 = dma.vmem_to_hbm [thread:$0]  (%p1923_p10), %s1739_s8, 128, %s1737_s12, %s1757_s5   ;;  %686 = vst.msk [vmem:[%s410_s16] sm:$0xff] %vm439_vm1, %v685_v31  ;;  %v965_v32 = vld [vmem:[%s1866_s4 + $0x2] ss:$0 sm:$0xff] }
 0x18c   : > { %s690_s18 = scalar_lea.sflag [#allocation4], %s1684_s23  ;;  %s1285_s29 = scalar_lea.vmem %s1747_s1, 128 }
 0x18d   : > { %p1286_p3 = scmp.ne.s32.totalorder %s1747_s1, %s1285_s29  ;;  %s1419_s14 = smov [#allocation10]  }
 0x18e   : > { %s1289_s22 = sshll.u32 %s1419_s14, 4  ;;  %s1290_s22 = int_to_ptr.vmem [resolvable:$false] %s1289_s22 }
 0x18f   : > { %p1287_p6 = pnand %p1286_p3, %p1923_p10  ;;  %s1291_s13 = scalar_lea.vmem %s1290_s22, 256 }
 0x190   : > { %p1292_p12 = scmp.lt.s32.totalorder %s1747_s1, %s1290_s22  ;;  %p1293_p0 = scmp.lt.s32.totalorder %s1291_s13, %s1285_s29 }
 0x191   : > { %p1288_p8 = pneg %p1287_p6 }
 0x192   : > { %p1294_p11 = por %p1293_p0, %p1292_p12 }
 0x194   : > { %p1295_p1 = pnand %p1294_p11, %p1288_p8 }
 0x196   : > { %1298 = shalt.err (!%p1295_p1)
}
 0x197   : > { %s1299_s23 = scalar_lea.hbm %s1745_s6, 128  ;;  %s1303_s12 = scalar_lea.hbm %s1922_s17, 256 }
 0x198   : > { %p1300_p9 = scmp.ne.s32.totalorder %s1745_s6, %s1299_s23  ;;  %p1304_p5 = scmp.lt.u32.totalorder %s1745_s6, %s1922_s17 }
 0x199   : > { %p1305_p13 = scmp.lt.u32.totalorder %s1303_s12, %s1299_s23  ;;  %p1307_p3 = scmp.lt.u32.totalorder %s1299_s23, %s1745_s6 }
 0x19a   : > { %p1301_p4 = pnand %p1300_p9, %p1923_p10 }
 0x19b   : > { %p1306_p7 = por %p1305_p13, %p1304_p5 }
 0x19c   : > { %p1302_p2 = pneg %p1301_p4 }
 0x19d   : > { %p1308_p6 = por %p1307_p3, %p1306_p7 }
 0x19f   : > { %p1309_p8 = pnand %p1308_p6, %p1302_p2 }
 0x1a1   : > { %1312 = shalt.err (!%p1309_p8)
}
 0x1a2   : > { %1051 = dma.vmem_to_hbm [thread:$0]  (%p1923_p10), %s1747_s1, 128, %s1745_s6, %s690_s18   ;;  %v681_v33 = vpop.f32.mrb[2].mxu0 }
 0x1a3   : > { %v682_v34 = vadd.f32 %v965_v32, %v681_v33  ;;  %v1022_v35 = vpop.f32.mrb[3].mxu0  ;;  %s1924_s9 = sld [smem:[#allocation29_spill]]  ;;  %s1313_s29 = scalar_lea.vmem %s743_s15, 128 }
 0x1a4   : > { %p1314_p12 = scmp.ne.s32.totalorder %s743_s15, %s1313_s29  ;;  %s1420_s14 = smov [#allocation13]  }
 0x1a5   : > { %688 = vst.msk [vmem:[%s424_s21] sm:$0xff] %vm439_vm1, %v682_v34  ;;  %s1317_s22 = sshll.u32 %s1420_s14, 4  ;;  %s1318_s22 = int_to_ptr.vmem [resolvable:$false] %s1317_s22 }
 0x1a6   : > { %p1315_p0 = pnand %p1314_p12, %p1923_p10  ;;  %s1319_s1 = scalar_lea.vmem %s1318_s22, 256 }
 0x1a7   : > { %p1320_p1 = scmp.lt.s32.totalorder %s743_s15, %s1318_s22  ;;  %p1321_p9 = scmp.lt.s32.totalorder %s1319_s1, %s1313_s29 }
 0x1a8   : > { %p1316_p11 = pneg %p1315_p0 }
 0x1a9   : > { %s1813_s19 = scalar_lea.hbm %s1924_s9, %s1724_s24  ;;  %p1322_p4 = por %p1321_p9, %p1320_p1 }
 0x1ab   : > { %p1323_p2 = pnand %p1322_p4, %p1316_p11 }
 0x1ad   : > { %1326 = shalt.err (!%p1323_p2)
}
 0x1ae   : > { %s1327_s7 = scalar_lea.hbm %s1813_s19, 128  ;;  %s1331_s21 = scalar_lea.hbm %s1924_s9, 256 }
 0x1af   : > { %p1328_p5 = scmp.ne.s32.totalorder %s1813_s19, %s1327_s7  ;;  %p1332_p3 = scmp.lt.u32.totalorder %s1813_s19, %s1924_s9 }
 0x1b0   : > { %p1333_p6 = scmp.lt.u32.totalorder %s1331_s21, %s1327_s7  ;;  %p1335_p12 = scmp.lt.u32.totalorder %s1327_s7, %s1813_s19 }
 0x1b1   : > { %p1329_p13 = pnand %p1328_p5, %p1923_p10 }
 0x1b2   : > { %p1334_p8 = por %p1333_p6, %p1332_p3 }
 0x1b3   : > { %p1330_p7 = pneg %p1329_p13 }
 0x1b4   : > { %p1336_p0 = por %p1335_p12, %p1334_p8 }
 0x1b6   : > { %p1337_p11 = pnand %p1336_p0, %p1330_p7 }
 0x1b8   : > { %1340 = shalt.err (!%p1337_p11)
}
 0x1b9   : > { %1053 = dma.vmem_to_hbm [thread:$0]  (%p1923_p10), %s743_s15, 128, %s1813_s19, %s1757_s5  }
 0x1ba PF: > { %s1925_s23 = sld [smem:[#allocation19_spill]]  ;;  %s1926_s8 = sld [smem:[#allocation25_spill]] }
 0x1bb   : > { %s1927_s16 = sld [smem:[#allocation21_spill]] }
 0x1c0   : > { %s754_s12 = sand.u32 1, %s1925_s23   ;;  %p1928_p1 = scmp.ne.s32.totalorder %s1926_s8, 0 }
 0x1c1   : > { %p1929_p9 = scmp.ge.s32.totalorder %s1927_s16, 2  ;;  %s755_s20 = scalar_lea.sflag [#allocation4], %s754_s12 }
 0x1c3   : > { %p1072_p4 = pnand %p1929_p9, %p1928_p1 }
 0x1c5   : > { %1378 = dma.done.wait (!%p1072_p4), %s755_s20, 128  }
 0x1c6   : > { %1380 = vsyncadd (!%p1072_p4), %s755_s20, 4294967168  ;;  %s1930_s27 = sadd.s32 4294967294, %s1927_s16  }
 0x1c7   : > { %s763_s10 = sand.u32 1, %s1930_s27  }
 0x1c8   : > { %s764_s30 = scalar_lea.sflag [#allocation12], %s763_s10 }
 0x1c9   : > { %1382 = dma.done.wait (!%p1072_p4), %s764_s30, 256  }
 0x1ca   : > { %1384 = vsyncadd (!%p1072_p4), %s764_s30, 4294967040  ;;  %s31_s29 = sadd.s32 1, %s1927_s16   ;;  %s1931_s28 = sld [smem:[#allocation23_spill]] }
 0x1cb   : > { %p28_p10 = scmp.ge.s32.totalorder %s31_s29, 4   ;;  %s1932_s27 = sld [smem:[#allocation20_spill]] }
 0x1cc   : > { %s1933_s15 = sld [smem:[#allocation22_spill]]  ;;  %s1934_s24 = smov %s1391_s25 }
 0x1cd   : > { %s1935_s25 = smov %s1395_s26  ;;  %30 = sbr.rel (!%p28_p10) target bundleno = 16 (0x10), region = 149 }
 0x1d0   : > { %s1936_s26 = smov %s1931_s28 }
 0x1d2   : > { %s1937_s28 = smov %s1933_s15 }
 0x1d4   :  { %778 = vsyncpa [#allocation3], 1 }
 0x1d5   :  { %780 = vsyncpa [#allocation3 + $0x1], 1 }
 0x1d6   :  { %781 = vsyncpa [#allocation6], 1 }
 0x1d7   :  { %783 = vsyncpa [#allocation6 + $0x1], 1 }
 0x1d8   :  { %784 = vsyncpa [#allocation9], 1 }
 0x1d9   :  { %785 = vsyncpa [#allocation4], 1 }
 0x1da   :  { %787 = vsyncpa [#allocation4 + $0x1], 1 }
 0x1db   :  { %788 = vsyncpa [#allocation12], 1 }
 0x1dc   :  { %790 = vsyncpa [#allocation12 + $0x1], 1 }

</bundles_post_ra>
